<compile_context>
chip_gen: v7x
topology: tpu7x:2x2x1
jax: 0.10.0
libtpu: 0.0.40
codegen_flags: <defaults>
</compile_context>

<pallas_src>
import functools

import jax
import jax.numpy as jnp
from jax.experimental import pallas as pl
from jax.experimental.pallas import tpu as pltpu

EPS = 1e-5   # nn.GroupNorm default eps
GROUPS = 8   # nn.GroupNorm(8, ...)


# --------------------------------- kernel ---------------------------------------
def _group_allreduce(v, cpg):
    """All-reduce within contiguous blocks of `cpg` rows (sublanes) of v: (M, L).

    Replaces the old (M, M) x (M, 1) indicator matmuls with static sublane rolls +
    select (VPU/XLU only, no MXU push/pop).
    """
    if cpg == 1:
        return v
    rid = jax.lax.broadcasted_iota(jnp.int32, v.shape, 0) % cpg
    out = v
    for k in range(1, cpg):
        down = jnp.roll(v, k, axis=0)        # row i -> v[i - k]
        up = jnp.roll(v, k - cpg, axis=0)    # row i -> v[i - k + cpg]
        out = out + jnp.where(rid >= k, down, up)
    return out


def _unet_block_kernel(x_ref, w1_ref, p1_ref, w2_ref, p2_ref, o_ref, y1pad_ref,
                       *, H, W, cpg, chunks1, chunks2, premask1, premask2):
    """One grid step = `spg` samples stacked along sublanes.

    x_ref    : (spg*Cinp, LP)  row-padded, flattened spatial, 1 guard elem each end
    w*_ref   : (n_chunks, spg*Cout, taps_per_chunk*spg*Cin_stage) block-diag weights
    p*_ref   : (3, spg*Cout, 1) [bias, gamma, beta], tiled per sample
    o_ref    : (spg*Cout, H*W) lane-dense output
    y1pad_ref: VMEM scratch (spg*Cout, LP) for the stage-1 -> stage-2 re-pad
    """
    HW = H * W
    LP = x_ref.shape[1]
    M = o_ref.shape[0]
    inv_n = 1.0 / float(HW * cpg)

    # keepL/keepR zero the last / first column of every padded row of a slab so the
    # dx=-1 / dx=+1 taps never see row wrap-around values (2 muls per stage).
    col_lp = (jax.lax.broadcasted_iota(jnp.int32, (1, LP), 1) + (W - 1)) % W
    keepL = (col_lp != W - 1).astype(jnp.float32)
    keepR = (col_lp != 0).astype(jnp.float32)
    # Per-output-column masks (fallback when 3 live slab copies would risk spills).
    col_hw = jax.lax.broadcasted_iota(jnp.int32, (1, HW), 1) % W
    lmask = (col_hw >= 1).astype(jnp.float32)
    rmask = (col_hw <= W - 2).astype(jnp.float32)

    def conv(slab, w_ref, chunks, premask):
        # 3x3 "same" conv as lane-dense matmuls (N = H*W on the MXU lane dim) built
        # from static lane shifts of the row-padded flattened slab (im2col, no gathers).
        # TODO(synk): if the MLIR shows these lane-offset slices materializing long
        # vselect chains, switch the shifts to pltpu.roll of an aligned slab.
        if premask:
            srcs = (slab * keepL, slab, slab * keepR)

            def tap(dy, dx):
                s = 1 + dy * W + (dx - 1)
                return srcs[dx][:, s:s + HW]
        else:
            def tap(dy, dx):
                s = 1 + dy * W + (dx - 1)
                t = slab[:, s:s + HW]
                if dx == 0:
                    t = t * lmask
                elif dx == 2:
                    t = t * rmask
                return t

        acc = None
        for c, taps in enumerate(chunks):
            parts = [tap(dy, dx) for (dy, dx) in taps]
            patch = parts[0] if len(parts) == 1 else jnp.concatenate(parts, axis=0)
            y = jnp.dot(w_ref[c], patch, preferred_element_type=jnp.float32)
            acc = y if acc is None else acc + y
        return acc

    def gn_silu(acc, p_ref):
        acc = acc + p_ref[0]                                   # conv bias
        # Single-pass per-channel stats, combined per group with sublane rolls.
        s1 = jnp.sum(acc, axis=1, keepdims=True)               # (M, 1)
        s2 = jnp.sum(acc * acc, axis=1, keepdims=True)         # (M, 1)
        st = _group_allreduce(jnp.concatenate([s1, s2], axis=1), cpg)
        mean = st[:, 0:1] * inv_n
        var = st[:, 1:2] * inv_n - mean * mean                 # biased, torch-style
        y = (acc - mean) * jax.lax.rsqrt(var + EPS) * p_ref[1] + p_ref[2]
        return y * jax.nn.sigmoid(y)                           # SiLU

    # Stage 1 (Cin -> Cout), straight from the pre-padded input tile.
    y1 = gn_silu(conv(x_ref[...], w1_ref, chunks1, premask1), p1_ref)

    # Re-pad for stage 2 through a VMEM scratch: zero the guard lanes (every step —
    # with a "parallel" grid axis not every core runs step 0) + one interior store.
    # The stage-1 activation never touches HBM.
    zl = W + 1
    y1pad_ref[:, :zl] = jnp.zeros((M, zl), jnp.float32)
    y1pad_ref[:, zl + HW:] = jnp.zeros((M, LP - zl - HW), jnp.float32)
    y1pad_ref[:, zl:zl + HW] = y1

    # Stage 2 (Cout -> Cout).
    y2 = gn_silu(conv(y1pad_ref[...], w2_ref, chunks2, premask2), p2_ref)
    o_ref[...] = y2.astype(o_ref.dtype)


# --------------------------------- wrapper ---------------------------------------
def _round_up(x, m):
    return (x + m - 1) // m * m


def _tensorcores_per_device():
    """TensorCores one pallas_call can shard a 'parallel' grid axis across."""
    try:
        kind = jax.devices()[0].device_kind.lower()
    except Exception:
        return 1
    if any(tag in kind for tag in ("lite", "v5e", "v6e")):
        return 1            # e-series: single TensorCore -> fold the whole batch
    return 2                # v4 / v5p / v7x: megacore -> keep >= 2 grid steps


def _pick_samples_per_step(n, n_tc, cap):
    """Largest batch fold that keeps the grid length a multiple of n_tc."""
    best = 1
    for s in range(1, min(n, cap) + 1):
        if n % s == 0 and (n // s) % n_tc == 0:
            best = s
    return best


def _chunk_taps(rows_per_tap):
    """Split the 9 conv taps into matmul chunks; keep each im2col slab <= ~20 vregs."""
    if 9 * rows_per_tap <= 80:
        return (tuple((dy, dx) for dy in range(3) for dx in range(3)),)  # fused K=9*C
    return tuple(tuple((dy, dx) for dx in range(3)) for dy in range(3))  # per-dy


def _prep_conv_weight(w_hwio, cin_pad, spg, chunks):
    """(3,3,Cin,Cout) HWIO -> (n_chunks, spg*Cout, taps_per_chunk*spg*cin_pad).

    Per tap, the (Cout, cin_pad) slab is made block-diagonal over the spg samples
    stacked along sublanes, so one matmul processes all folded samples at once.
    """
    _, _, cin, _ = w_hwio.shape
    if cin_pad > cin:
        w_hwio = jnp.pad(w_hwio, ((0, 0), (0, 0), (0, cin_pad - cin), (0, 0)))
    eye = jnp.eye(spg, dtype=w_hwio.dtype)
    slabs = []
    for taps in chunks:
        cols = [jnp.kron(eye, w_hwio[dy, dx].T) for (dy, dx) in taps]
        slabs.append(jnp.concatenate(cols, axis=1))
    return jnp.stack(slabs, axis=0)


def unet_block(x_nchw, params, *, samples_per_step=None):
    """x_nchw: (N, Cin, H, W) f32 (PyTorch layout). Returns (N, Cout, H, W) f32."""
    N, Cin, H, W = x_nchw.shape
    Cout = params["w1"].shape[-1]
    assert Cout % GROUPS == 0
    cpg = Cout // GROUPS
    HW = H * W
    LP = (H + 2) * W + 2            # row-padded + flattened + 1 guard elem per end
    Cinp = _round_up(Cin, 8)        # 8-sublane-aligned taps / concats

    cap = max(1, 96 // (3 * Cout))  # keep per-chunk im2col rows <= 96 (<= 24 vregs)
    spg = samples_per_step or _pick_samples_per_step(N, _tensorcores_per_device(), cap)
    assert N % spg == 0
    steps = N // spg
    M = spg * Cout

    # ---- input prep: pad channels to Cinp, zero-pad rows, flatten, add guards ----
    xp = jnp.pad(x_nchw, ((0, 0), (0, Cinp - Cin), (1, 1), (0, 0)))
    xp = xp.reshape(N, Cinp, (H + 2) * W)
    xp = jnp.pad(xp, ((0, 0), (0, 0), (1, 1))).reshape(N * Cinp, LP)

    # ---- weights / per-channel params (block-diag / tiled over folded samples) ----
    chunks1 = _chunk_taps(spg * Cinp)
    chunks2 = _chunk_taps(spg * Cout)
    w1t = _prep_conv_weight(params["w1"], Cinp, spg, chunks1)
    w2t = _prep_conv_weight(params["w2"], Cout, spg, chunks2)

    def prep_p(b, g, bt):
        return jnp.stack([jnp.tile(b, spg), jnp.tile(g, spg), jnp.tile(bt, spg)],
                         axis=0)[..., None]

    p1 = prep_p(params["b1"], params["gamma1"], params["beta1"])
    p2 = prep_p(params["b2"], params["gamma2"], params["beta2"])

    kernel = functools.partial(
        _unet_block_kernel, H=H, W=W, cpg=cpg,
        chunks1=chunks1, chunks2=chunks2,
        premask1=(spg * Cinp <= 16), premask2=(M <= 16))

    flops = 2 * N * HW * 9 * (Cin * Cout + Cout * Cout)
    bytes_accessed = 4 * (xp.size + w1t.size + w2t.size + p1.size + p2.size
                          + N * Cout * HW)

    # TODO(synk): for real UNet resolutions/channel counts, tile H*W spatially with
    # halos; size tiles against v7x's 64 MiB physical (32 MiB default-scoped) VMEM and
    # set vmem_limit_bytes explicitly. At 16x16 whole-image-per-step is right.
    out = pl.pallas_call(
        kernel,
        out_shape=jax.ShapeDtypeStruct((N * Cout, HW), jnp.float32),
        grid_spec=pltpu.PrefetchScalarGridSpec(
            num_scalar_prefetch=0,
            grid=(steps,),
            in_specs=[
                pl.BlockSpec((spg * Cinp, LP), lambda i: (i, 0)),
                pl.BlockSpec(w1t.shape, lambda i: (0, 0, 0)),
                pl.BlockSpec(p1.shape, lambda i: (0, 0, 0)),
                pl.BlockSpec(w2t.shape, lambda i: (0, 0, 0)),
                pl.BlockSpec(p2.shape, lambda i: (0, 0, 0)),
            ],
            out_specs=pl.BlockSpec((M, HW), lambda i: (i, 0)),
            scratch_shapes=[pltpu.VMEM((M, LP), jnp.float32)],
        ),
        compiler_params=pltpu.CompilerParams(
            dimension_semantics=("parallel",)),   # megacore: shard steps across TCs
        cost_estimate=pl.CostEstimate(
            flops=int(flops),
            transcendentals=int(2 * N * HW * Cout),
            bytes_accessed=int(bytes_accessed)),
    )(xp, w1t, p1, w2t, p2)
    return out.reshape(N, Cout, H, W)


# ----------------------------- pure-JAX reference ------------------------------
def _ref_block(x, w, b, gamma, beta):
    y = jax.lax.conv_general_dilated(
        x, w, window_strides=(1, 1), padding="SAME",
        dimension_numbers=("NCHW", "HWIO", "NCHW"))
    y = y + b.reshape(1, -1, 1, 1)
    N, C, H, W = y.shape
    cpg = C // GROUPS
    yg = y.reshape(N, GROUPS, cpg, H, W)
    mean = yg.mean(axis=(2, 3, 4), keepdims=True)
    var = yg.var(axis=(2, 3, 4), keepdims=True)
    yn = ((yg - mean) * jax.lax.rsqrt(var + EPS)).reshape(N, C, H, W)
    yn = yn * gamma.reshape(1, -1, 1, 1) + beta.reshape(1, -1, 1, 1)
    return yn * jax.nn.sigmoid(yn)


def _ref_unet_block(x, p):
    h = _ref_block(x, p["w1"], p["b1"], p["gamma1"], p["beta1"])
    return _ref_block(h, p["w2"], p["b2"], p["gamma2"], p["beta2"])


if __name__ == "__main__":
    # Module config: in_channels=4, out_channels=16 (divisible by 8 groups).
    N, Cin, Cout, H, W = 2, 4, 16, 16, 16

    key = jax.random.PRNGKey(0)
    k_x, k_w1, k_b1, k_w2, k_b2 = jax.random.split(key, 5)

    # Input in PyTorch's NCHW convention (used directly by the kernel wrapper).
    x = jax.random.normal(k_x, (N, Cin, H, W), jnp.float32)

    params = {
        "w1": jax.random.normal(k_w1, (3, 3, Cin, Cout), jnp.float32) * 0.1,
        "b1": jax.random.normal(k_b1, (Cout,), jnp.float32) * 0.05,
        "gamma1": jnp.ones((Cout,), jnp.float32),    # nn.GroupNorm default init
        "beta1": jnp.zeros((Cout,), jnp.float32),
        "w2": jax.random.normal(k_w2, (3, 3, Cout, Cout), jnp.float32) * 0.1,
        "b2": jax.random.normal(k_b2, (Cout,), jnp.float32) * 0.05,
        "gamma2": jnp.ones((Cout,), jnp.float32),
        "beta2": jnp.zeros((Cout,), jnp.float32),
    }

    out = jax.block_until_ready(jax.jit(unet_block)(x, params))
    ref = jax.block_until_ready(_ref_unet_block(x, params))

    assert out.shape == (N, Cout, H, W)
    err = float(jnp.max(jnp.abs(out - ref)))
    assert jnp.allclose(out, ref, atol=1e-4, rtol=1e-4), err
    print("KERNEL_OK")
</pallas_src>

<mosaic_0001>
module attributes {stable_mosaic.version = 11 : i64} {
  func.func @_unet_block_kernel(%arg0: i32, %arg1: memref<8x290xf32, #tpu.memory_space<vmem>>, %arg2: memref<1x16x72xf32, #tpu.memory_space<vmem>>, %arg3: memref<3x16x1xf32, #tpu.memory_space<vmem>>, %arg4: memref<3x16x48xf32, #tpu.memory_space<vmem>>, %arg5: memref<3x16x1xf32, #tpu.memory_space<vmem>>, %arg6: memref<16x256xf32, #tpu.memory_space<vmem>>, %arg7: memref<16x290xf32, #tpu.memory_space<vmem>>) attributes {dimension_semantics = [#tpu.dimension_semantics<parallel>], iteration_bounds = array<i64: 2>, scalar_prefetch = 0 : i64, scratch_operands = 1 : i64, tpu.core_type = #tpu.core_type<tc>, window_params = [{transform_indices = @transform_0, window_bounds = array<i64: 8, 290>}, {pipeline_mode = #tpu.pipeline_mode<synchronous>, transform_indices = @transform_1, window_bounds = array<i64: 1, 16, 72>}, {pipeline_mode = #tpu.pipeline_mode<synchronous>, transform_indices = @transform_2, window_bounds = array<i64: 3, 16, 1>}, {pipeline_mode = #tpu.pipeline_mode<synchronous>, transform_indices = @transform_3, window_bounds = array<i64: 3, 16, 48>}, {pipeline_mode = #tpu.pipeline_mode<synchronous>, transform_indices = @transform_4, window_bounds = array<i64: 3, 16, 1>}, {transform_indices = @transform_5, window_bounds = array<i64: 16, 256>}]} {
    %0 = tpu.iota {dimensions = array<i32: 1>} : vector<1x290xi32>
    %c15_i32 = arith.constant 15 : i32
    %1 = vector.broadcast %c15_i32 : i32 to vector<1x290xi32>
    %2 = arith.addi %0, %1 : vector<1x290xi32>
    %c16_i32 = arith.constant 16 : i32
    %c0_i32 = arith.constant 0 : i32
    %3 = arith.cmpi eq, %c16_i32, %c0_i32 : i32
    %c1_i32 = arith.constant 1 : i32
    %4 = arith.select %3, %c1_i32, %c16_i32 : i32
    %5 = vector.broadcast %4 : i32 to vector<1x290xi32>
    %6 = arith.remsi %2, %5 : vector<1x290xi32>
    %c0_i32_0 = arith.constant 0 : i32
    %7 = vector.broadcast %c0_i32_0 : i32 to vector<1x290xi32>
    %8 = arith.cmpi ne, %6, %7 : vector<1x290xi32>
    %c0_i32_1 = arith.constant 0 : i32
    %9 = vector.broadcast %c0_i32_1 : i32 to vector<1x290xi32>
    %10 = arith.cmpi slt, %6, %9 : vector<1x290xi32>
    %c0_i32_2 = arith.constant 0 : i32
    %11 = arith.cmpi slt, %4, %c0_i32_2 : i32
    %12 = vector.broadcast %11 : i1 to vector<1x290xi1>
    %13 = vector.broadcast %12 : vector<1x290xi1> to vector<1x290xi1>
    %14 = arith.xori %10, %13 : vector<1x290xi1>
    %15 = arith.andi %14, %8 : vector<1x290xi1>
    %16 = vector.broadcast %4 : i32 to vector<1x290xi32>
    %17 = arith.addi %6, %16 : vector<1x290xi32>
    %18 = arith.select %15, %17, %6 : vector<1x290xi1>, vector<1x290xi32>
    %c15_i32_3 = arith.constant 15 : i32
    %19 = vector.broadcast %c15_i32_3 : i32 to vector<1x290xi32>
    %20 = arith.cmpi ne, %18, %19 : vector<1x290xi32>
    %21 = arith.extui %20 : vector<1x290xi1> to vector<1x290xi32>
    %22 = arith.sitofp %21 : vector<1x290xi32> to vector<1x290xf32>
    %c0_i32_4 = arith.constant 0 : i32
    %23 = vector.broadcast %c0_i32_4 : i32 to vector<1x290xi32>
    %24 = arith.cmpi ne, %18, %23 : vector<1x290xi32>
    %25 = arith.extui %24 : vector<1x290xi1> to vector<1x290xi32>
    %26 = arith.sitofp %25 : vector<1x290xi32> to vector<1x290xf32>
    %c0 = arith.constant 0 : index
    %c0_5 = arith.constant 0 : index
    %27 = vector.load %arg1[%c0, %c0_5] : memref<8x290xf32, #tpu.memory_space<vmem>>, vector<8x290xf32>
    %28 = vector.broadcast %22 : vector<1x290xf32> to vector<8x290xf32>
    %29 = arith.mulf %27, %28 : vector<8x290xf32>
    %30 = vector.broadcast %26 : vector<1x290xf32> to vector<8x290xf32>
    %31 = arith.mulf %27, %30 : vector<8x290xf32>
    %32 = vector.extract_strided_slice %29 {offsets = [0, 0], sizes = [8, 256], strides = [1, 1]} : vector<8x290xf32> to vector<8x256xf32>
    %33 = vector.extract_strided_slice %27 {offsets = [0, 1], sizes = [8, 256], strides = [1, 1]} : vector<8x290xf32> to vector<8x256xf32>
    %34 = vector.extract_strided_slice %31 {offsets = [0, 2], sizes = [8, 256], strides = [1, 1]} : vector<8x290xf32> to vector<8x256xf32>
    %35 = vector.extract_strided_slice %29 {offsets = [0, 16], sizes = [8, 256], strides = [1, 1]} : vector<8x290xf32> to vector<8x256xf32>
    %36 = vector.extract_strided_slice %27 {offsets = [0, 17], sizes = [8, 256], strides = [1, 1]} : vector<8x290xf32> to vector<8x256xf32>
    %37 = vector.extract_strided_slice %31 {offsets = [0, 18], sizes = [8, 256], strides = [1, 1]} : vector<8x290xf32> to vector<8x256xf32>
    %38 = vector.extract_strided_slice %29 {offsets = [0, 32], sizes = [8, 256], strides = [1, 1]} : vector<8x290xf32> to vector<8x256xf32>
    %39 = vector.extract_strided_slice %27 {offsets = [0, 33], sizes = [8, 256], strides = [1, 1]} : vector<8x290xf32> to vector<8x256xf32>
    %40 = vector.extract_strided_slice %31 {offsets = [0, 34], sizes = [8, 256], strides = [1, 1]} : vector<8x290xf32> to vector<8x256xf32>
    %41 = tpu.concatenate %32, %33, %34, %35, %36, %37, %38, %39, %40 in 0 : vector<8x256xf32>, vector<8x256xf32>, vector<8x256xf32>, vector<8x256xf32>, vector<8x256xf32>, vector<8x256xf32>, vector<8x256xf32>, vector<8x256xf32>, vector<8x256xf32> -> vector<72x256xf32>
    %c0_6 = arith.constant 0 : index
    %c0_7 = arith.constant 0 : index
    %c0_8 = arith.constant 0 : index
    %42 = vector.load %arg2[%c0_6, %c0_7, %c0_8] : memref<1x16x72xf32, #tpu.memory_space<vmem>>, vector<1x16x72xf32>
    %43 = vector.shape_cast %42 : vector<1x16x72xf32> to vector<16x72xf32>
    %cst = arith.constant dense<0.000000e+00> : vector<16x256xf32>
    %44 = tpu.matmul %43, %41, %cst {dimension_numbers = #tpu.dot_dimension_numbers<[1], [0], [0], [1], [0, 0, 1, 1], [], []>} : vector<16x72xf32>, vector<72x256xf32>, vector<16x256xf32> -> vector<16x256xf32>
    %c0_9 = arith.constant 0 : index
    %c0_10 = arith.constant 0 : index
    %c0_11 = arith.constant 0 : index
    %45 = vector.load %arg3[%c0_9, %c0_10, %c0_11] : memref<3x16x1xf32, #tpu.memory_space<vmem>>, vector<1x16x1xf32>
    %46 = vector.shape_cast %45 : vector<1x16x1xf32> to vector<16x1xf32>
    %47 = vector.broadcast %46 : vector<16x1xf32> to vector<16x256xf32>
    %48 = arith.addf %44, %47 : vector<16x256xf32>
    %cst_12 = arith.constant dense<0.000000e+00> : vector<16xf32>
    %49 = vector.multi_reduction <add>, %48, %cst_12 [1] : vector<16x256xf32> to vector<16xf32>
    %50 = vector.shape_cast %49 : vector<16xf32> to vector<16x1xf32>
    %51 = arith.mulf %48, %48 : vector<16x256xf32>
    %cst_13 = arith.constant dense<0.000000e+00> : vector<16xf32>
    %52 = vector.multi_reduction <add>, %51, %cst_13 [1] : vector<16x256xf32> to vector<16xf32>
    %53 = vector.shape_cast %52 : vector<16xf32> to vector<16x1xf32>
    %54 = tpu.concatenate %50, %53 in 1 : vector<16x1xf32>, vector<16x1xf32> -> vector<16x2xf32>
    %55 = tpu.iota {dimensions = array<i32: 0>} : vector<16x2xi32>
    %c2_i32 = arith.constant 2 : i32
    %c0_i32_14 = arith.constant 0 : i32
    %56 = arith.cmpi eq, %c2_i32, %c0_i32_14 : i32
    %c1_i32_15 = arith.constant 1 : i32
    %57 = arith.select %56, %c1_i32_15, %c2_i32 : i32
    %58 = vector.broadcast %57 : i32 to vector<16x2xi32>
    %59 = arith.remsi %55, %58 : vector<16x2xi32>
    %c0_i32_16 = arith.constant 0 : i32
    %60 = vector.broadcast %c0_i32_16 : i32 to vector<16x2xi32>
    %61 = arith.cmpi ne, %59, %60 : vector<16x2xi32>
    %c0_i32_17 = arith.constant 0 : i32
    %62 = vector.broadcast %c0_i32_17 : i32 to vector<16x2xi32>
    %63 = arith.cmpi slt, %59, %62 : vector<16x2xi32>
    %c0_i32_18 = arith.constant 0 : i32
    %64 = arith.cmpi slt, %57, %c0_i32_18 : i32
    %65 = vector.broadcast %64 : i1 to vector<16x2xi1>
    %66 = vector.broadcast %65 : vector<16x2xi1> to vector<16x2xi1>
    %67 = arith.xori %63, %66 : vector<16x2xi1>
    %68 = arith.andi %67, %61 : vector<16x2xi1>
    %69 = vector.broadcast %57 : i32 to vector<16x2xi32>
    %70 = arith.addi %59, %69 : vector<16x2xi32>
    %71 = arith.select %68, %70, %59 : vector<16x2xi1>, vector<16x2xi32>
    %72 = vector.extract_strided_slice %54 {offsets = [15, 0], sizes = [1, 2], strides = [1, 1]} : vector<16x2xf32> to vector<1x2xf32>
    %73 = vector.extract_strided_slice %54 {offsets = [0, 0], sizes = [15, 2], strides = [1, 1]} : vector<16x2xf32> to vector<15x2xf32>
    %74 = tpu.concatenate %72, %73 in 0 : vector<1x2xf32>, vector<15x2xf32> -> vector<16x2xf32>
    %75 = vector.extract_strided_slice %54 {offsets = [1, 0], sizes = [15, 2], strides = [1, 1]} : vector<16x2xf32> to vector<15x2xf32>
    %76 = vector.extract_strided_slice %54 {offsets = [0, 0], sizes = [1, 2], strides = [1, 1]} : vector<16x2xf32> to vector<1x2xf32>
    %77 = tpu.concatenate %75, %76 in 0 : vector<15x2xf32>, vector<1x2xf32> -> vector<16x2xf32>
    %c1_i32_19 = arith.constant 1 : i32
    %78 = vector.broadcast %c1_i32_19 : i32 to vector<16x2xi32>
    %79 = arith.cmpi sge, %71, %78 : vector<16x2xi32>
    %80 = arith.select %79, %74, %77 : vector<16x2xi1>, vector<16x2xf32>
    %81 = arith.addf %54, %80 : vector<16x2xf32>
    %82 = vector.extract_strided_slice %81 {offsets = [0, 0], sizes = [16, 1], strides = [1, 1]} : vector<16x2xf32> to vector<16x1xf32>
    %cst_20 = arith.constant 0.001953125 : f32
    %83 = vector.broadcast %cst_20 : f32 to vector<16x1xf32>
    %84 = arith.mulf %82, %83 : vector<16x1xf32>
    %85 = vector.extract_strided_slice %81 {offsets = [0, 1], sizes = [16, 1], strides = [1, 1]} : vector<16x2xf32> to vector<16x1xf32>
    %cst_21 = arith.constant 0.001953125 : f32
    %86 = vector.broadcast %cst_21 : f32 to vector<16x1xf32>
    %87 = arith.mulf %85, %86 : vector<16x1xf32>
    %88 = arith.mulf %84, %84 : vector<16x1xf32>
    %89 = arith.subf %87, %88 : vector<16x1xf32>
    %90 = vector.broadcast %84 : vector<16x1xf32> to vector<16x256xf32>
    %91 = arith.subf %48, %90 : vector<16x256xf32>
    %cst_22 = arith.constant 9.99999974E-6 : f32
    %92 = vector.broadcast %cst_22 : f32 to vector<16x1xf32>
    %93 = arith.addf %89, %92 : vector<16x1xf32>
    %94 = math.rsqrt %93 : vector<16x1xf32>
    %95 = vector.broadcast %94 : vector<16x1xf32> to vector<16x256xf32>
    %96 = arith.mulf %91, %95 : vector<16x256xf32>
    %c1 = arith.constant 1 : index
    %c0_23 = arith.constant 0 : index
    %c0_24 = arith.constant 0 : index
    %97 = vector.load %arg3[%c1, %c0_23, %c0_24] : memref<3x16x1xf32, #tpu.memory_space<vmem>>, vector<1x16x1xf32>
    %98 = vector.shape_cast %97 : vector<1x16x1xf32> to vector<16x1xf32>
    %99 = vector.broadcast %98 : vector<16x1xf32> to vector<16x256xf32>
    %100 = arith.mulf %96, %99 : vector<16x256xf32>
    %c2 = arith.constant 2 : index
    %c0_25 = arith.constant 0 : index
    %c0_26 = arith.constant 0 : index
    %101 = vector.load %arg3[%c2, %c0_25, %c0_26] : memref<3x16x1xf32, #tpu.memory_space<vmem>>, vector<1x16x1xf32>
    %102 = vector.shape_cast %101 : vector<1x16x1xf32> to vector<16x1xf32>
    %103 = vector.broadcast %102 : vector<16x1xf32> to vector<16x256xf32>
    %104 = arith.addf %100, %103 : vector<16x256xf32>
    %105 = arith.negf %104 : vector<16x256xf32>
    %106 = math.exp %105 : vector<16x256xf32>
    %cst_27 = arith.constant 1.000000e+00 : f32
    %107 = vector.broadcast %cst_27 : f32 to vector<16x256xf32>
    %108 = arith.addf %107, %106 : vector<16x256xf32>
    %109 = arith.divf %107, %108 : vector<16x256xf32>
    %110 = arith.mulf %104, %109 : vector<16x256xf32>
    %cst_28 = arith.constant 0.000000e+00 : f32
    %111 = vector.broadcast %cst_28 : f32 to vector<16x17xf32>
    %c0_29 = arith.constant 0 : index
    %c0_30 = arith.constant 0 : index
    %112 = vector.load %arg7[%c0_29, %c0_30] : memref<16x290xf32, #tpu.memory_space<vmem>>, vector<16x17xf32>
    tpu.vector_store %arg7[%c0_29, %c0_30], %111 {strides = array<i32>} : memref<16x290xf32, #tpu.memory_space<vmem>>, vector<16x17xf32>,
    %cst_31 = arith.constant 0.000000e+00 : f32
    %113 = vector.broadcast %cst_31 : f32 to vector<16x17xf32>
    %c0_32 = arith.constant 0 : index
    %c273 = arith.constant 273 : index
    %114 = vector.load %arg7[%c0_32, %c273] : memref<16x290xf32, #tpu.memory_space<vmem>>, vector<16x17xf32>
    tpu.vector_store %arg7[%c0_32, %c273], %113 {strides = array<i32>} : memref<16x290xf32, #tpu.memory_space<vmem>>, vector<16x17xf32>,
    %c0_33 = arith.constant 0 : index
    %c17 = arith.constant 17 : index
    %115 = vector.load %arg7[%c0_33, %c17] : memref<16x290xf32, #tpu.memory_space<vmem>>, vector<16x256xf32>
    tpu.vector_store %arg7[%c0_33, %c17], %110 {strides = array<i32>} : memref<16x290xf32, #tpu.memory_space<vmem>>, vector<16x256xf32>,
    %c0_34 = arith.constant 0 : index
    %c0_35 = arith.constant 0 : index
    %116 = vector.load %arg7[%c0_34, %c0_35] : memref<16x290xf32, #tpu.memory_space<vmem>>, vector<16x290xf32>
    %117 = vector.broadcast %22 : vector<1x290xf32> to vector<16x290xf32>
    %118 = arith.mulf %116, %117 : vector<16x290xf32>
    %119 = vector.broadcast %26 : vector<1x290xf32> to vector<16x290xf32>
    %120 = arith.mulf %116, %119 : vector<16x290xf32>
    %121 = vector.extract_strided_slice %118 {offsets = [0, 0], sizes = [16, 256], strides = [1, 1]} : vector<16x290xf32> to vector<16x256xf32>
    %122 = vector.extract_strided_slice %116 {offsets = [0, 1], sizes = [16, 256], strides = [1, 1]} : vector<16x290xf32> to vector<16x256xf32>
    %123 = vector.extract_strided_slice %120 {offsets = [0, 2], sizes = [16, 256], strides = [1, 1]} : vector<16x290xf32> to vector<16x256xf32>
    %124 = tpu.concatenate %121, %122, %123 in 0 : vector<16x256xf32>, vector<16x256xf32>, vector<16x256xf32> -> vector<48x256xf32>
    %c0_36 = arith.constant 0 : index
    %c0_37 = arith.constant 0 : index
    %c0_38 = arith.constant 0 : index
    %125 = vector.load %arg4[%c0_36, %c0_37, %c0_38] : memref<3x16x48xf32, #tpu.memory_space<vmem>>, vector<1x16x48xf32>
    %126 = vector.shape_cast %125 : vector<1x16x48xf32> to vector<16x48xf32>
    %cst_39 = arith.constant dense<0.000000e+00> : vector<16x256xf32>
    %127 = tpu.matmul %126, %124, %cst_39 {dimension_numbers = #tpu.dot_dimension_numbers<[1], [0], [0], [1], [0, 0, 1, 1], [], []>} : vector<16x48xf32>, vector<48x256xf32>, vector<16x256xf32> -> vector<16x256xf32>
    %128 = vector.extract_strided_slice %118 {offsets = [0, 16], sizes = [16, 256], strides = [1, 1]} : vector<16x290xf32> to vector<16x256xf32>
    %129 = vector.extract_strided_slice %116 {offsets = [0, 17], sizes = [16, 256], strides = [1, 1]} : vector<16x290xf32> to vector<16x256xf32>
    %130 = vector.extract_strided_slice %120 {offsets = [0, 18], sizes = [16, 256], strides = [1, 1]} : vector<16x290xf32> to vector<16x256xf32>
    %131 = tpu.concatenate %128, %129, %130 in 0 : vector<16x256xf32>, vector<16x256xf32>, vector<16x256xf32> -> vector<48x256xf32>
    %c1_40 = arith.constant 1 : index
    %c0_41 = arith.constant 0 : index
    %c0_42 = arith.constant 0 : index
    %132 = vector.load %arg4[%c1_40, %c0_41, %c0_42] : memref<3x16x48xf32, #tpu.memory_space<vmem>>, vector<1x16x48xf32>
    %133 = vector.shape_cast %132 : vector<1x16x48xf32> to vector<16x48xf32>
    %cst_43 = arith.constant dense<0.000000e+00> : vector<16x256xf32>
    %134 = tpu.matmul %133, %131, %cst_43 {dimension_numbers = #tpu.dot_dimension_numbers<[1], [0], [0], [1], [0, 0, 1, 1], [], []>} : vector<16x48xf32>, vector<48x256xf32>, vector<16x256xf32> -> vector<16x256xf32>
    %135 = arith.addf %127, %134 : vector<16x256xf32>
    %136 = vector.extract_strided_slice %118 {offsets = [0, 32], sizes = [16, 256], strides = [1, 1]} : vector<16x290xf32> to vector<16x256xf32>
    %137 = vector.extract_strided_slice %116 {offsets = [0, 33], sizes = [16, 256], strides = [1, 1]} : vector<16x290xf32> to vector<16x256xf32>
    %138 = vector.extract_strided_slice %120 {offsets = [0, 34], sizes = [16, 256], strides = [1, 1]} : vector<16x290xf32> to vector<16x256xf32>
    %139 = tpu.concatenate %136, %137, %138 in 0 : vector<16x256xf32>, vector<16x256xf32>, vector<16x256xf32> -> vector<48x256xf32>
    %c2_44 = arith.constant 2 : index
    %c0_45 = arith.constant 0 : index
    %c0_46 = arith.constant 0 : index
    %140 = vector.load %arg4[%c2_44, %c0_45, %c0_46] : memref<3x16x48xf32, #tpu.memory_space<vmem>>, vector<1x16x48xf32>
    %141 = vector.shape_cast %140 : vector<1x16x48xf32> to vector<16x48xf32>
    %cst_47 = arith.constant dense<0.000000e+00> : vector<16x256xf32>
    %142 = tpu.matmul %141, %139, %cst_47 {dimension_numbers = #tpu.dot_dimension_numbers<[1], [0], [0], [1], [0, 0, 1, 1], [], []>} : vector<16x48xf32>, vector<48x256xf32>, vector<16x256xf32> -> vector<16x256xf32>
    %143 = arith.addf %135, %142 : vector<16x256xf32>
    %c0_48 = arith.constant 0 : index
    %c0_49 = arith.constant 0 : index
    %c0_50 = arith.constant 0 : index
    %144 = vector.load %arg5[%c0_48, %c0_49, %c0_50] : memref<3x16x1xf32, #tpu.memory_space<vmem>>, vector<1x16x1xf32>
    %145 = vector.shape_cast %144 : vector<1x16x1xf32> to vector<16x1xf32>
    %146 = vector.broadcast %145 : vector<16x1xf32> to vector<16x256xf32>
    %147 = arith.addf %143, %146 : vector<16x256xf32>
    %cst_51 = arith.constant dense<0.000000e+00> : vector<16xf32>
    %148 = vector.multi_reduction <add>, %147, %cst_51 [1] : vector<16x256xf32> to vector<16xf32>
    %149 = vector.shape_cast %148 : vector<16xf32> to vector<16x1xf32>
    %150 = arith.mulf %147, %147 : vector<16x256xf32>
    %cst_52 = arith.constant dense<0.000000e+00> : vector<16xf32>
    %151 = vector.multi_reduction <add>, %150, %cst_52 [1] : vector<16x256xf32> to vector<16xf32>
    %152 = vector.shape_cast %151 : vector<16xf32> to vector<16x1xf32>
    %153 = tpu.concatenate %149, %152 in 1 : vector<16x1xf32>, vector<16x1xf32> -> vector<16x2xf32>
    %154 = tpu.iota {dimensions = array<i32: 0>} : vector<16x2xi32>
    %c2_i32_53 = arith.constant 2 : i32
    %c0_i32_54 = arith.constant 0 : i32
    %155 = arith.cmpi eq, %c2_i32_53, %c0_i32_54 : i32
    %c1_i32_55 = arith.constant 1 : i32
    %156 = arith.select %155, %c1_i32_55, %c2_i32_53 : i32
    %157 = vector.broadcast %156 : i32 to vector<16x2xi32>
    %158 = arith.remsi %154, %157 : vector<16x2xi32>
    %c0_i32_56 = arith.constant 0 : i32
    %159 = vector.broadcast %c0_i32_56 : i32 to vector<16x2xi32>
    %160 = arith.cmpi ne, %158, %159 : vector<16x2xi32>
    %c0_i32_57 = arith.constant 0 : i32
    %161 = vector.broadcast %c0_i32_57 : i32 to vector<16x2xi32>
    %162 = arith.cmpi slt, %158, %161 : vector<16x2xi32>
    %c0_i32_58 = arith.constant 0 : i32
    %163 = arith.cmpi slt, %156, %c0_i32_58 : i32
    %164 = vector.broadcast %163 : i1 to vector<16x2xi1>
    %165 = vector.broadcast %164 : vector<16x2xi1> to vector<16x2xi1>
    %166 = arith.xori %162, %165 : vector<16x2xi1>
    %167 = arith.andi %166, %160 : vector<16x2xi1>
    %168 = vector.broadcast %156 : i32 to vector<16x2xi32>
    %169 = arith.addi %158, %168 : vector<16x2xi32>
    %170 = arith.select %167, %169, %158 : vector<16x2xi1>, vector<16x2xi32>
    %171 = vector.extract_strided_slice %153 {offsets = [15, 0], sizes = [1, 2], strides = [1, 1]} : vector<16x2xf32> to vector<1x2xf32>
    %172 = vector.extract_strided_slice %153 {offsets = [0, 0], sizes = [15, 2], strides = [1, 1]} : vector<16x2xf32> to vector<15x2xf32>
    %173 = tpu.concatenate %171, %172 in 0 : vector<1x2xf32>, vector<15x2xf32> -> vector<16x2xf32>
    %174 = vector.extract_strided_slice %153 {offsets = [1, 0], sizes = [15, 2], strides = [1, 1]} : vector<16x2xf32> to vector<15x2xf32>
    %175 = vector.extract_strided_slice %153 {offsets = [0, 0], sizes = [1, 2], strides = [1, 1]} : vector<16x2xf32> to vector<1x2xf32>
    %176 = tpu.concatenate %174, %175 in 0 : vector<15x2xf32>, vector<1x2xf32> -> vector<16x2xf32>
    %c1_i32_59 = arith.constant 1 : i32
    %177 = vector.broadcast %c1_i32_59 : i32 to vector<16x2xi32>
    %178 = arith.cmpi sge, %170, %177 : vector<16x2xi32>
    %179 = arith.select %178, %173, %176 : vector<16x2xi1>, vector<16x2xf32>
    %180 = arith.addf %153, %179 : vector<16x2xf32>
    %181 = vector.extract_strided_slice %180 {offsets = [0, 0], sizes = [16, 1], strides = [1, 1]} : vector<16x2xf32> to vector<16x1xf32>
    %cst_60 = arith.constant 0.001953125 : f32
    %182 = vector.broadcast %cst_60 : f32 to vector<16x1xf32>
    %183 = arith.mulf %181, %182 : vector<16x1xf32>
    %184 = vector.extract_strided_slice %180 {offsets = [0, 1], sizes = [16, 1], strides = [1, 1]} : vector<16x2xf32> to vector<16x1xf32>
    %cst_61 = arith.constant 0.001953125 : f32
    %185 = vector.broadcast %cst_61 : f32 to vector<16x1xf32>
    %186 = arith.mulf %184, %185 : vector<16x1xf32>
    %187 = arith.mulf %183, %183 : vector<16x1xf32>
    %188 = arith.subf %186, %187 : vector<16x1xf32>
    %189 = vector.broadcast %183 : vector<16x1xf32> to vector<16x256xf32>
    %190 = arith.subf %147, %189 : vector<16x256xf32>
    %cst_62 = arith.constant 9.99999974E-6 : f32
    %191 = vector.broadcast %cst_62 : f32 to vector<16x1xf32>
    %192 = arith.addf %188, %191 : vector<16x1xf32>
    %193 = math.rsqrt %192 : vector<16x1xf32>
    %194 = vector.broadcast %193 : vector<16x1xf32> to vector<16x256xf32>
    %195 = arith.mulf %190, %194 : vector<16x256xf32>
    %c1_63 = arith.constant 1 : index
    %c0_64 = arith.constant 0 : index
    %c0_65 = arith.constant 0 : index
    %196 = vector.load %arg5[%c1_63, %c0_64, %c0_65] : memref<3x16x1xf32, #tpu.memory_space<vmem>>, vector<1x16x1xf32>
    %197 = vector.shape_cast %196 : vector<1x16x1xf32> to vector<16x1xf32>
    %198 = vector.broadcast %197 : vector<16x1xf32> to vector<16x256xf32>
    %199 = arith.mulf %195, %198 : vector<16x256xf32>
    %c2_66 = arith.constant 2 : index
    %c0_67 = arith.constant 0 : index
    %c0_68 = arith.constant 0 : index
    %200 = vector.load %arg5[%c2_66, %c0_67, %c0_68] : memref<3x16x1xf32, #tpu.memory_space<vmem>>, vector<1x16x1xf32>
    %201 = vector.shape_cast %200 : vector<1x16x1xf32> to vector<16x1xf32>
    %202 = vector.broadcast %201 : vector<16x1xf32> to vector<16x256xf32>
    %203 = arith.addf %199, %202 : vector<16x256xf32>
    %204 = arith.negf %203 : vector<16x256xf32>
    %205 = math.exp %204 : vector<16x256xf32>
    %cst_69 = arith.constant 1.000000e+00 : f32
    %206 = vector.broadcast %cst_69 : f32 to vector<16x256xf32>
    %207 = arith.addf %206, %205 : vector<16x256xf32>
    %208 = arith.divf %206, %207 : vector<16x256xf32>
    %209 = arith.mulf %203, %208 : vector<16x256xf32>
    %c0_70 = arith.constant 0 : index
    %c0_71 = arith.constant 0 : index
    %210 = vector.load %arg6[%c0_70, %c0_71] : memref<16x256xf32, #tpu.memory_space<vmem>>, vector<16x256xf32>
    tpu.vector_store %arg6[%c0_70, %c0_71], %209 {strides = array<i32>} : memref<16x256xf32, #tpu.memory_space<vmem>>, vector<16x256xf32>,
    return
  }
  func.func @transform_0(%arg0: i32) -> (i32, i32) {
    %c0_i32 = arith.constant 0 : i32
    %c0_i32_0 = arith.constant 0 : i32
    return %arg0, %c0_i32 : i32, i32
  }
  func.func @transform_1(%arg0: i32) -> (i32, i32, i32) {
    %c0_i32 = arith.constant 0 : i32
    %c0_i32_0 = arith.constant 0 : i32
    %c0_i32_1 = arith.constant 0 : i32
    %c0_i32_2 = arith.constant 0 : i32
    return %c0_i32, %c0_i32_0, %c0_i32_1 : i32, i32, i32
  }
  func.func @transform_2(%arg0: i32) -> (i32, i32, i32) {
    %c0_i32 = arith.constant 0 : i32
    %c0_i32_0 = arith.constant 0 : i32
    %c0_i32_1 = arith.constant 0 : i32
    %c0_i32_2 = arith.constant 0 : i32
    return %c0_i32, %c0_i32_0, %c0_i32_1 : i32, i32, i32
  }
  func.func @transform_3(%arg0: i32) -> (i32, i32, i32) {
    %c0_i32 = arith.constant 0 : i32
    %c0_i32_0 = arith.constant 0 : i32
    %c0_i32_1 = arith.constant 0 : i32
    %c0_i32_2 = arith.constant 0 : i32
    return %c0_i32, %c0_i32_0, %c0_i32_1 : i32, i32, i32
  }
  func.func @transform_4(%arg0: i32) -> (i32, i32, i32) {
    %c0_i32 = arith.constant 0 : i32
    %c0_i32_0 = arith.constant 0 : i32
    %c0_i32_1 = arith.constant 0 : i32
    %c0_i32_2 = arith.constant 0 : i32
    return %c0_i32, %c0_i32_0, %c0_i32_1 : i32, i32, i32
  }
  func.func @transform_5(%arg0: i32) -> (i32, i32) {
    %c0_i32 = arith.constant 0 : i32
    %c0_i32_0 = arith.constant 0 : i32
    return %arg0, %c0_i32 : i32, i32
  }
}

</mosaic_0001>

<bundles_post_ra>
// kernel: unet_block.1
= control target key start
LH: loop header
LB: loop body
LE: loop exit
PB: predicated region body
PF: predicated region fallthrough
CT: control target
= control target key end

     0   :  { %s1770_s18 = smov 0   ;;  %s2082_s0 = inlined_call_operand.vmem [shape: f32[16,290], index: 0, kind: input, shape index: {}]   ;;  %s2083_s1 = inlined_call_operand.vmem [shape: f32[1,16,72], index: 1, kind: input, shape index: {}]   ;;  %s2084_s2 = inlined_call_operand.vmem [shape: f32[3,16,1], index: 2, kind: input, shape index: {}]   ;;  %s2085_s3 = inlined_call_operand.vmem [shape: f32[3,16,48], index: 3, kind: input, shape index: {}]   ;;  %s2086_s4 = inlined_call_operand.vmem [shape: f32[3,16,1], index: 4, kind: input, shape index: {}]   ;;  %s2087_s5 = inlined_call_operand.vmem [shape: f32[32,256], index: 5, kind: output, shape index: {}]  }
   0x1 LB: > { %s1776_s19 = sadd.s32 4294967295, %s1725_s18   ;;  %p1390_p0 = scmp.ge.s32.totalorder %s1725_s18, 1  ;;  %s1725_s18 = sphi %s1770_s18, %s15_s18  }
   0x2   : > { %p187_p1 = scmp.lt.s32.totalorder %s1725_s18, 3 }
   0x4   : > { %p188_p2 = pnand %p1390_p0, %p187_p1 }
   0x5   : > { %p216_p3 = scmp.lt.s32.totalorder (!%p188_p2), %s1776_s19, 1  ;;  %v228_v0 = vlaneseq (!%p188_p2)  ;;  %v1727_v1 = vmov (!%p188_p2), 0.0   ;;  %s1728_s25 = smov (!%p188_p2), 127   ;;  %v1735_v30 = vmov (!%p188_p2), 0   ;;  %v397_v31 = vld [vmem:[%s2084_s2] sm:$0xff] (!%p188_p2)  ;;  %v398_v32 = vld [vmem:[%s2084_s2 + $0x8] sm:$0xff] (!%p188_p2) }
   0x6   : > { %191 = sbr.rel (%p188_p2) target bundleno = 1913 (0x779), region = 40  ;;  %480 = vmatprep.mubr.f32.mxu0 (!%p188_p2), %v1727_v1  ;;  %999 = vmatprep.mubr.f32.mxu1 (!%p188_p2), %v1727_v1  ;;  %s1729_s26 = smov (!%p188_p2), 112   ;;  %vm307_vm6 = vcmask (!%p188_p2), 1039360   ;;  %vm321_vm7 = vcmask (!%p188_p2), 1031168   ;;  %vm335_vm8 = vcmask (!%p188_p2), 916480   ;;  %vm346_vm9 = vcmask (!%p188_p2), 908288  }
   0x7   : > { %v229_v2 = vand.u32 (!%p188_p2), 127, %v228_v0  ;;  %s1730_s27 = smov (!%p188_p2), 126   ;;  %s1731_s28 = smov (!%p188_p2), 111   ;;  %1550 = vset.pattern.permute.xlu0 (!%p188_p2), %v1735_v30  ;;  %1549 = vset.pattern.permute.xlu1 (!%p188_p2), %v1735_v30  ;;  %vm357_vm10 = vcmask (!%p188_p2), 900096   ;;  %vm368_vm11 = vcmask (!%p188_p2), 785408   ;;  %vm379_vm12 = vcmask (!%p188_p2), 777216  }
   0x8   : > { %s1732_s29 = smov (!%p188_p2), 110   ;;  %s1733_s30 = smov (!%p188_p2), 96   ;;  %vm390_vm13 = vcmask (!%p188_p2), 769024   ;;  %vm409_vm14 = vcmask (!%p188_p2), 588800   ;;  %vm509_vm15 = vcmask (!%p188_p2), 7168  }
   0x9   : > { %v232_v3 = vadd.s32 (!%p188_p2), 15, %v229_v2  ;;  %v230_v4 = vadd.s32 (!%p188_p2), 128, %v229_v2  ;;  %v231_v5 = vadd.s32 (!%p188_p2), 256, %v229_v2  ;;  %s1734_s6 = smov (!%p188_p2), 95   ;;  %s1736_s7 = smov (!%p188_p2), 94  }
   0xa   : > { %s1738_s16 = smov (!%p188_p2), 1  }
   0xb   : > { %v239_v6 = vand.u32 (!%p188_p2), 15, %v232_v3  ;;  %v233_v7 = vadd.s32 (!%p188_p2), 15, %v230_v4  ;;  %v234_v8 = vadd.s32 (!%p188_p2), 15, %v231_v5 }
   0xd   : > { %s217_s20 = scalar_select %p216_p3, %s1776_s19, 1  ;;  %vm271_vm0 = vcmp.ne.s32.totalorder %v239_v6, 15  ;;  %v246_v13 = vand.u32 15, %v233_v7  ;;  %v253_v14 = vand.u32 15, %v234_v8  ;;  %vm1791_vm1 = vcmp.ne.s32.totalorder %v239_v6, 0 }
   0xe   : > { %v1789_v15 = vsel %vm271_vm0, 1.0, %v1727_v1  ;;  %v1818_v27 = vsel %vm1791_vm1, 1.0, %v1727_v1  ;;  %vm543_vm0 = vcmask 1040384   ;;  %vm549_vm1 = vcmask 1046528  }
   0xf   : > { %s1492_s21 = smul.u32 24, %s217_s20  ;;  %vm281_vm2 = vcmp.ne.s32.totalorder %v246_v13, 0  ;;  %vm282_vm3 = vcmp.ne.s32.totalorder %v253_v14, 0  ;;  %vm272_vm4 = vcmp.ne.s32.totalorder %v246_v13, 15  ;;  %vm273_vm5 = vcmp.ne.s32.totalorder %v253_v14, 15 }
  0x10   : > { %v1798_v18 = vsel %vm281_vm2, 1.0, %v1727_v1  ;;  %v1801_v19 = vsel %vm282_vm3, 1.0, %v1727_v1  ;;  %v1804_v20 = vsel %vm272_vm4, 1.0, %v1727_v1  ;;  %v1810_v23 = vsel %vm273_vm5, 1.0, %v1727_v1 }
  0x11   : > { %s220_s24 = scalar_lea.vmem %s2082_s0, %s1492_s21  ;;  %vm671_vm4 = vcmask 138240   ;;  %vm674_vm5 = vcmask 277640  }
  0x12   : > { %v290_v9 = vld [vmem:[%s220_s24 + $0x8] sm:$0xff]  ;;  %v291_v10 = vld [vmem:[%s220_s24 + $0x10] sm:$0xff]  ;;  %v289_v11 = vld [vmem:[%s220_s24] sm:$0xff]  ;;  %675 = vst.msk [vmem:[#allocation2 + $0x10] sm:$0xff] %vm674_vm5, %v1727_v1 }
  0x13   : > { %v1514_v12 = vpack.i.bf16 %v291_v10, %v290_v9  ;;  %v292_v17 = vmul.f32 %v1789_v15, %v289_v11  ;;  %v296_v21 = vmul.f32 %v1798_v18, %v290_v9  ;;  %v297_v22 = vmul.f32 %v1801_v19, %v291_v10  ;;  %672 = vst.msk [vmem:[#allocation2] sm:$0xff] %vm671_vm4, %v1727_v1 }
  0x14   : > { %v293_v24 = vmul.f32 %v1804_v20, %v290_v9  ;;  %v294_v25 = vmul.f32 %v1810_v23, %v291_v10  ;;  %v295_v29 = vmul.f32 %v1818_v27, %v289_v11  ;;  %673 = vst.msk [vmem:[#allocation2 + $0x18] sm:$0xff] %vm671_vm4, %v1727_v1 }
  0x15   : > { %1515 = vrot.lane.b32.xlu0 %v1514_v12, %s1728_s25  ;;  %329 = vrot.lane.b32.xlu1 %v292_v17, %s1729_s26  ;;  %v1524_v26 = vpack.i.bf16 %v297_v22, %v296_v21  ;;  %676 = vst.msk [vmem:[#allocation2 + $0x28] sm:$0xff] %vm674_vm5, %v1727_v1 }
  0x16   : > { %v1529_v28 = vpack.i.bf16 %v294_v25, %v293_v24 }
  0x19   : > { %301 = vrot.lane.b32.xlu0 %v289_v11, %s1728_s25  ;;  %1525 = vrot.lane.b32.xlu1 %v1524_v26, %s1730_s27 }
  0x1d   : > { %1520 = vrot.lane.b32.xlu0 %v1514_v12, %s1731_s28  ;;  %1530 = vrot.lane.b32.xlu1 %v1529_v28, %s1729_s26 }
  0x21   : > { %315 = vrot.lane.b32.xlu0 %v295_v29, %s1730_s27  ;;  %1535 = vrot.lane.b32.xlu1 %v1524_v26, %s1732_s29 }
  0x25   : > { %340 = vrot.lane.b32.xlu0 %v289_v11, %s1731_s28  ;;  %351 = vrot.lane.b32.xlu1 %v295_v29, %s1732_s29 }
  0x29   : > { %1540 = vrot.lane.b32.xlu0 %v1529_v28, %s1733_s30  ;;  %1545 = vrot.lane.b32.xlu1 %v1514_v12, %s1734_s6 }
  0x2d   : > { %362 = vrot.lane.b32.xlu0 %v292_v17, %s1733_s30  ;;  %373 = vrot.lane.b32.xlu1 %v289_v11, %s1734_s6  ;;  %s1739_s6 = smov 17  }
  0x31   : > { %386 = vrot.lane.b32.xlu0 %v296_v21, %s1736_s7  ;;  %388 = vrot.lane.b32.xlu1 %v297_v22, %s1736_s7 }
  0x35   : > { %384 = vrot.lane.b32.xlu0 %v295_v29, %s1736_s7  ;;  %401 = vperm.xlu1 %1549, %v397_v31  }
  0x39   : > { %406 = vperm.xlu0 %1550, %v398_v32   ;;  %v395_v32 = vld [vmem:[%s2083_s1] sm:$0xff] }
  0x87   : > { %v1516_v33 = vpop.permute.xlu0 %1515  ;;  %v330_v36 = vpop.permute.xlu1 %329 }
  0x88   : > { %v1518_v34 = vunpack.i.h.bf16 %v1516_v33  ;;  %v1517_v35 = vunpack.i.l.bf16 %v1516_v33 }
  0x8a   : > { %v309_v37 = vsel %vm307_vm6, %v1517_v35, %v1518_v34  ;;  %v396_v34 = vld [vmem:[%s2083_s1 + $0x8] sm:$0xff] }
  0x8b   : > { %v302_v38 = vpop.permute.xlu0 %301  ;;  %v1432_v39 = vpack.c.bf16 %v309_v37, %v293_v24  ;;  %v1526_v41 = vpop.permute.xlu1 %1525 }
  0x8c   : > { %v308_v40 = vsel %vm307_vm6, %v302_v38, %v1517_v35  ;;  %v1528_v44 = vunpack.i.h.bf16 %v1526_v41  ;;  %v1527_v45 = vunpack.i.l.bf16 %v1526_v41 }
  0x8d   : > { %1433 = vmatprep.subr.bf16.mxu0 %v1432_v39  ;;  %v1434_v42 = vpack.c.bf16 %v308_v40, %v292_v17 }
  0x8e   : > { %v323_v54 = vsel %vm321_vm7, %v1527_v45, %v1528_v44 }
  0x8f   : > { %v1521_v43 = vpop.permute.xlu0 %1520  ;;  %1435 = vmatpush1.bf16.msra.mxu0 %v1434_v42  ;;  %v1531_v46 = vpop.permute.xlu1 %1530 }
  0x90   : > { %v1533_v47 = vunpack.i.h.bf16 %v1531_v46  ;;  %v1532_v48 = vunpack.i.l.bf16 %v1531_v46  ;;  %v1523_v49 = vunpack.i.h.bf16 %v1521_v43  ;;  %v1522_v50 = vunpack.i.l.bf16 %v1521_v43 }
  0x92   : > { %v336_v53 = vsel %vm335_vm8, %v330_v36, %v1532_v48  ;;  %v337_v55 = vsel %vm335_vm8, %v1532_v48, %v1533_v47  ;;  %v348_v62 = vsel %vm346_vm9, %v1522_v50, %v1523_v49 }
  0x93   : > { %v316_v51 = vpop.permute.xlu0 %315  ;;  %v1536_v57 = vpop.permute.xlu1 %1535  ;;  %v1436_v58 = vpack.c.bf16 %v337_v55, %v323_v54 }
  0x94   : > { %v322_v52 = vsel %vm321_vm7, %v316_v51, %v1527_v45  ;;  %v1538_v59 = vunpack.i.h.bf16 %v1536_v57  ;;  %v1537_v60 = vunpack.i.l.bf16 %v1536_v57 }
  0x95   : > { %v1438_v56 = vpack.c.bf16 %v336_v53, %v322_v52  ;;  %1437 = vmatprep.subr.bf16.mxu0 %v1436_v58  ;;  %v513_v53 = vshrl.u32 %v228_v0, 7  ;;  %v1423_v0 = vld [vmem:[%s2086_s4 + $0x20] sm:$0xff] }
  0x96   : > { %v359_v63 = vsel %vm357_vm10, %v1537_v60, %v1538_v59 }
  0x97   : > { %v341_v61 = vpop.permute.xlu0 %340  ;;  %1439 = vmatpush1.bf16.msra.mxu0 %v1438_v56  ;;  %v352_v2 = vpop.permute.xlu1 %351  ;;  %v1440_v3 = vpack.c.bf16 %v359_v63, %v348_v62  ;;  %v514_v55 = vadd.s32 8, %v513_v53  ;;  %v519_v58 = vand.u32 1, %v513_v53  ;;  %v1421_v62 = vld [vmem:[%s2086_s4 + $0x10] sm:$0xff] }
  0x98   : > { %v347_v4 = vsel %vm346_vm9, %v341_v61, %v1522_v50  ;;  %v358_v5 = vsel %vm357_vm10, %v352_v2, %v1537_v60  ;;  %vm697_vm9 = vcmask 1047688  }
  0x99   : > { %v1442_v6 = vpack.c.bf16 %v358_v5, %v347_v4  ;;  %1441 = vmatprep.subr.bf16.mxu0 %v1440_v3  ;;  %v526_v59 = vand.u32 1, %v514_v55  ;;  %vm1877_vm3 = vcmp.ge.s32.totalorder %v519_v58, 1 }
  0x9b   : > { %v1541_v7 = vpop.permute.xlu0 %1540  ;;  %v1546_v10 = vpop.permute.xlu1 %1545  ;;  %1443 = vmatpush1.bf16.msra.mxu0 %v1442_v6  ;;  %vm1872_vm2 = vcmp.ge.s32.totalorder %v526_v59, 1 }
  0x9c   : > { %v1543_v8 = vunpack.i.h.bf16 %v1541_v7  ;;  %v1542_v9 = vunpack.i.l.bf16 %v1541_v7  ;;  %v1548_v11 = vunpack.i.h.bf16 %v1546_v10  ;;  %v1547_v12 = vunpack.i.l.bf16 %v1546_v10 }
  0x9e   : > { %v370_v14 = vsel %vm368_vm11, %v1542_v9, %v1543_v8  ;;  %v381_v16 = vsel %vm379_vm12, %v1547_v12, %v1548_v11 }
  0x9f   : > { %v363_v13 = vpop.permute.xlu0 %362  ;;  %v374_v17 = vpop.permute.xlu1 %373  ;;  %v1444_v21 = vpack.c.bf16 %v381_v16, %v370_v14  ;;  %v1737_v14 = vmov 1  }
  0xa0   : > { %v369_v22 = vsel %vm368_vm11, %v363_v13, %v1542_v9  ;;  %v380_v24 = vsel %vm379_vm12, %v374_v17, %v1547_v12  ;;  %1551 = vset.pattern.permute.xlu0 %v1737_v14 }
  0xa1   : > { %v1446_v25 = vpack.c.bf16 %v380_v24, %v369_v22  ;;  %1445 = vmatprep.subr.bf16.mxu0 %v1444_v21  ;;  %v1403_v24 = vld [vmem:[%s2084_s2 + $0x10] sm:$0xff] }
  0xa3   : > { %v387_v26 = vpop.permute.xlu0 %386  ;;  %v389_v28 = vpop.permute.xlu1 %388  ;;  %1447 = vmatpush1.bf16.msra.mxu0 %v1446_v25  ;;  %v1405_v25 = vld [vmem:[%s2084_s2 + $0x20] sm:$0xff] }
  0xa4   : > { %v392_v29 = vsel %vm390_vm13, %v387_v26, %v389_v28 }
  0xa5   : > { %432 = vmatprep.subr.mxu0 %v392_v29 }
  0xa7   : > { %v385_v31 = vpop.permute.xlu0 %384 }
  0xa8   : > { %v391_v33 = vsel %vm390_vm13, %v385_v31, %v387_v26 }
  0xa9   : > { %433 = vmatpush1.msra.mxu0 %v391_v33 }
  0xaa   : > { %1401 = vmatmul.mubr.msk.f32.vlgmr.msra.gmra.mrb[0].mxu0 %vm409_vm14, %v395_v32 }
  0xab   : > { %486 = vmatprep.mubr.f32.mxu0 %v1727_v1 }
  0xae   : > { %1402 = vmatmul.mubr.msk.f32.gmra.mrb[2].mxu0 %vm409_vm14, %v396_v34 }
  0xaf   : > { %916 = vmatprep.mubr.f32.mxu0 %v1727_v1 }
  0xb4   : > { %v402_v35 = vpop.permute.xlu1 %401 }
  0xb8   : > { %v407_v40 = vpop.permute.xlu0 %406 }
 0x17d   : > { %v482_v36 = vpop.f32.mrb[0].mxu0 }
 0x17e   : > { %v1850_v37 = vadd.f32 %v482_v36, %v402_v35  ;;  %v484_v38 = vpop.f32.mrb[1].mxu0  ;;  %v1404_v36 = vld [vmem:[%s2084_s2 + $0x18] sm:$0xff] }
 0x17f   : > { %v1852_v39 = vadd.f32 %v484_v38, %v402_v35  ;;  %v1406_v38 = vld [vmem:[%s2084_s2 + $0x28] sm:$0xff] }
 0x180   : > { %v499_v43 = vmul.f32 %v1850_v37, %v1850_v37 }
 0x181   : > { %v488_v41 = vpop.f32.mrb[2].mxu0  ;;  %v493_v42 = vadd.f32 %v1852_v39, %v1850_v37  ;;  %v500_v44 = vmul.f32 %v1852_v39, %v1852_v39 }
 0x182   : > { %v1860_v45 = vadd.f32 %v488_v41, %v407_v40  ;;  %v490_v46 = vpop.f32.mrb[3].mxu0 }
 0x183   : > { %v1862_v47 = vadd.f32 %v490_v46, %v407_v40  ;;  %494 = vadd.xlane.f32.xlu1 %v493_v42  ;;  %v503_v49 = vadd.f32 %v500_v44, %v499_v43 }
 0x184   : > { %v501_v50 = vmul.f32 %v1860_v45, %v1860_v45 }
 0x185   : > { %v496_v48 = vadd.f32 %v1862_v47, %v1860_v45  ;;  %v502_v51 = vmul.f32 %v1862_v47, %v1862_v47 }
 0x187   : > { %497 = vadd.xlane.f32.xlu0 %v496_v48  ;;  %504 = vadd.xlane.f32.xlu1 %v503_v49  ;;  %v506_v52 = vadd.f32 %v502_v51, %v501_v50 }
 0x18b   : > { %507 = vadd.xlane.f32.xlu0 %v506_v52 }
 0x210   : > { %v495_v54 = vpop.xlane.xlu1 %494 }
 0x214   : > { %v498_v56 = vpop.xlane.xlu0 %497  ;;  %v505_v57 = vpop.xlane.xlu1 %504 }
 0x215   : > { %v510_v60 = vsel %vm509_vm15, %v495_v54, %v505_v57 }
 0x216   : > { %v544_v2 = vrot.slane %v510_v60, 7  ;;  %v550_v3 = vrot.slane %v510_v60, 1 }
 0x218   : > { %v508_v61 = vpop.xlane.xlu0 %507 }
 0x219   : > { %v511_v63 = vsel %vm509_vm15, %v498_v56, %v508_v61 }
 0x21a   : > { %v540_v4 = vrot.slane %v511_v63, 7  ;;  %v551_v5 = vrot.slane %v511_v63, 1 }
 0x21c   : > { %v545_v6 = vsel %vm543_vm0, %v544_v2, %v540_v4  ;;  %v548_v7 = vsel %vm543_vm0, %v540_v4, %v544_v2  ;;  %v552_v8 = vsel %vm549_vm1, %v550_v3, %v551_v5  ;;  %v556_v9 = vsel %vm549_vm1, %v551_v5, %v550_v3 }
 0x21d   : > { %v560_v10 = vsel %vm1872_vm2, %v545_v6, %v556_v9  ;;  %v559_v11 = vsel %vm1877_vm3, %v548_v7, %v552_v8 }
 0x21e   : > { %v562_v12 = vadd.f32 %v560_v10, %v511_v63  ;;  %v561_v13 = vadd.f32 %v559_v11, %v510_v60 }
 0x220   : > { %v564_v16 = vmul.f32 0.001953125, %v562_v12  ;;  %v563_v17 = vmul.f32 0.001953125, %v561_v13 }
 0x222   : > { %v565_v21 = vmul.f32 %v563_v17, %v563_v17  ;;  %v566_v22 = vmul.f32 %v564_v16, %v564_v16 }
 0x224   : > { %569 = vrot.lane.b32.xlu1 %v565_v21, %s1738_s16  ;;  %571 = vrot.lane.b32.xlu0 %v566_v22, %s1738_s16 }
 0x228   : > { %579 = vperm.xlu1 %1549, %v563_v17  }
 0x22c   : > { %584 = vperm.xlu1 %1549, %v564_v16  }
 0x230   : > { %614 = vperm.xlu1 %1549, %v1403_v24  }
 0x234   : > { %631 = vperm.xlu1 %1549, %v1405_v25  }
 0x238   : > { %1553 = vset.pattern.permute.xlu1 %v1737_v14 }
 0x296   : > { %v570_v26 = vpop.permute.xlu1 %569  ;;  %v572_v28 = vpop.permute.xlu0 %571 }
 0x297   : > { %v575_v29 = vsub.f32 %v563_v17, %v570_v26  ;;  %v576_v31 = vsub.f32 %v564_v16, %v572_v28 }
 0x299   : > { %v591_v32 = vadd.f32 1e-05, %v575_v29  ;;  %v592_v33 = vadd.f32 1e-05, %v576_v31 }
 0x29b   : > { %1679 = vrsqrt.f32 %v591_v32 }
 0x29c   : > { %1681 = vrsqrt.f32 %v592_v33 }
 0x2a5   : > { %v1680_v34 = vpop.eup %1679 }
 0x2a6   : > { %v1682_v35 = vpop.eup %1681  ;;  %597 = vperm.xlu0 %1551, %v1680_v34  }
 0x2a7   : > { %602 = vperm.xlu1 %1553, %v1682_v35   ;;  %v580_v40 = vpop.permute.xlu1 %579 }
 0x2a8   : > { %v587_v44 = vsub.f32 %v1850_v37, %v580_v40  ;;  %v588_v46 = vsub.f32 %v1852_v39, %v580_v40 }
 0x2aa   : > { %1552 = vset.pattern.permute.xlu0 %v1735_v30 }
 0x2ab   : > { %619 = vperm.xlu0 %1552, %v1404_v36   ;;  %1554 = vset.pattern.permute.xlu1 %v1735_v30  ;;  %v585_v41 = vpop.permute.xlu1 %584 }
 0x2ac   : > { %636 = vperm.xlu1 %1554, %v1406_v38   ;;  %v589_v52 = vsub.f32 %v1860_v45, %v585_v41  ;;  %v590_v53 = vsub.f32 %v1862_v47, %v585_v41 }
 0x2af   : > { %v615_v42 = vpop.permute.xlu1 %614 }
 0x2b3   : > { %v632_v43 = vpop.permute.xlu1 %631 }
 0x325   : > { %v598_v48 = vpop.permute.xlu0 %597 }
 0x326   : > { %v603_v49 = vpop.permute.xlu1 %602  ;;  %v605_v50 = vmul.f32 %v598_v48, %v587_v44  ;;  %v606_v51 = vmul.f32 %v598_v48, %v588_v46 }
 0x327   : > { %v607_v56 = vmul.f32 %v603_v49, %v589_v52  ;;  %v608_v57 = vmul.f32 %v603_v49, %v590_v53 }
 0x328   : > { %v622_v54 = vmul.f32 %v615_v42, %v605_v50  ;;  %v623_v55 = vmul.f32 %v615_v42, %v606_v51 }
 0x32a   : > { %v639_v58 = vadd.f32 %v632_v43, %v622_v54  ;;  %v640_v59 = vadd.f32 %v632_v43, %v623_v55  ;;  %v620_v60 = vpop.permute.xlu0 %619 }
 0x32b   : > { %v624_v61 = vmul.f32 %v620_v60, %v607_v56  ;;  %v625_v63 = vmul.f32 %v620_v60, %v608_v57  ;;  %v637_v37 = vpop.permute.xlu1 %636 }
 0x32c   : > { %v1407_v2 = vmul.f32 -1.442695, %v639_v58  ;;  %v1408_v39 = vmul.f32 -1.442695, %v640_v59 }
 0x32d   : > { %v641_v3 = vadd.f32 %v637_v37, %v624_v61  ;;  %v642_v4 = vadd.f32 %v637_v37, %v625_v63 }
 0x32e   : > { %1683 = vpow2.f32 %v1407_v2 }
 0x32f   : > { %1685 = vpow2.f32 %v1408_v39  ;;  %v1409_v5 = vmul.f32 -1.442695, %v641_v3  ;;  %v1410_v45 = vmul.f32 -1.442695, %v642_v4 }
 0x331   : > { %1687 = vpow2.f32 %v1409_v5 }
 0x332   : > { %1689 = vpow2.f32 %v1410_v45 }
 0x338   : > { %v1684_v47 = vpop.eup %1683 }
 0x339   : > { %v1686_v6 = vpop.eup %1685  ;;  %v655_v7 = vadd.f32 1.0, %v1684_v47 }
 0x33a   : > { %v656_v8 = vadd.f32 1.0, %v1686_v6 }
 0x33b   : > { %v1688_v9 = vpop.eup %1687  ;;  %1691 = vrcp.f32 %v655_v7 }
 0x33c   : > { %v1690_v10 = vpop.eup %1689  ;;  %1693 = vrcp.f32 %v656_v8  ;;  %v657_v11 = vadd.f32 1.0, %v1688_v9 }
 0x33d   : > { %v658_v12 = vadd.f32 1.0, %v1690_v10 }
 0x33e   : > { %1695 = vrcp.f32 %v657_v11 }
 0x33f   : > { %1697 = vrcp.f32 %v658_v12 }
 0x345   : > { %v1692_v13 = vpop.eup %1691 }
 0x346   : > { %v1694_v16 = vpop.eup %1693  ;;  %v667_v17 = vmul.f32 %v1692_v13, %v639_v58 }
 0x347   : > { %v668_v21 = vmul.f32 %v1694_v16, %v640_v59 }
 0x348   : > { %v1696_v22 = vpop.eup %1695  ;;  %681 = vrot.lane.b32.xlu0 %v667_v17, %s1739_s6 }
 0x349   : > { %v1698_v24 = vpop.eup %1697  ;;  %v669_v25 = vmul.f32 %v1696_v22, %v641_v3  ;;  %683 = vrot.lane.b32.xlu1 %v668_v21, %s1739_s6 }
 0x34a   : > { %v670_v26 = vmul.f32 %v1698_v24, %v642_v4 }
 0x34c   : > { %685 = vrot.lane.b32.xlu0 %v669_v25, %s1739_s6 }
 0x34d   : > { %687 = vrot.lane.b32.xlu1 %v670_v26, %s1739_s6 }
 0x3ba   : > { %v682_v28 = vpop.permute.xlu0 %681 }
 0x3bb   : > { %v684_v29 = vpop.permute.xlu1 %683  ;;  %698 = vst.msk [vmem:[#allocation2] sm:$0xff] %vm697_vm9, %v682_v28 }
 0x3bc   : > { %700 = vst.msk [vmem:[#allocation2 + $0x10] sm:$0xff] %vm671_vm4, %v684_v29  ;;  %v689_v31 = vsel %vm671_vm4, %v682_v28, %v684_v29 }
 0x3bd   : > { %v711_v35 = vmul.f32 %v1804_v20, %v689_v31 }
 0x3be   : > { %v686_v32 = vpop.permute.xlu0 %685 }
 0x3bf   : > { %v688_v33 = vpop.permute.xlu1 %687  ;;  %701 = vst.msk [vmem:[#allocation2 + $0x18] sm:$0xff] %vm697_vm9, %v686_v32 }
 0x3c0   : > { %703 = vst.msk [vmem:[#allocation2 + $0x28] sm:$0xff] %vm671_vm4, %v688_v33  ;;  %v690_v34 = vsel %vm671_vm4, %v686_v32, %v688_v33 }
 0x3c1   : > { %v714_v36 = vmul.f32 %v1804_v20, %v690_v34  ;;  %v717_v20 = vmul.f32 %v1798_v18, %v689_v31 }
 0x3c2   : > { %v704_v40 = vld [vmem:[#allocation2] sm:$0xff] }
 0x3c3   : > { %v1460_v38 = vpack.c.bf16 %v714_v36, %v711_v35  ;;  %v706_v41 = vld [vmem:[#allocation2 + $0x10] sm:$0xff]  ;;  %v710_v46 = vmul.f32 %v1789_v15, %v704_v40  ;;  %v716_v56 = vmul.f32 %v1818_v27, %v704_v40 }
 0x3c4   : > { %v718_v50 = vmul.f32 %v1801_v19, %v706_v41  ;;  %v1560_v52 = vpack.i.bf16 %v706_v41, %v689_v31 }
 0x3c5   : > { %1461 = vmatprep.subr.bf16.mxu1 %v1460_v38 }
 0x3c6   : > { %v707_v42 = vld [vmem:[#allocation2 + $0x18] sm:$0xff]  ;;  %v1570_v54 = vpack.i.bf16 %v718_v50, %v717_v20 }
 0x3c7   : > { %v1555_v43 = vpack.i.bf16 %v707_v42, %v704_v40  ;;  %v709_v44 = vld [vmem:[#allocation2 + $0x28] sm:$0xff]  ;;  %v713_v48 = vmul.f32 %v1789_v15, %v707_v42  ;;  %v719_v55 = vmul.f32 %v1818_v27, %v707_v42  ;;  %v720_v15 = vmul.f32 %v1798_v18, %v690_v34  ;;  %v774_v40 = vld [vmem:[%s2085_s3] sm:$0xff] }
 0x3c8   : > { %v1565_v49 = vpack.i.bf16 %v709_v44, %v690_v34  ;;  %v721_v53 = vmul.f32 %v1801_v19, %v709_v44  ;;  %v712_v19 = vmul.f32 %v1810_v23, %v706_v41  ;;  %v715_v60 = vmul.f32 %v1810_v23, %v709_v44 }
 0x3c9   : > { %1556 = vrot.lane.b32.xlu0 %v1555_v43, %s1728_s25  ;;  %v1462_v51 = vpack.c.bf16 %v713_v48, %v710_v46  ;;  %v1580_v58 = vpack.i.bf16 %v719_v55, %v716_v56  ;;  %v1585_v59 = vpack.i.bf16 %v713_v48, %v710_v46 }
 0x3ca   : > { %1566 = vrot.lane.b32.xlu1 %v1565_v49, %s1728_s25  ;;  %v1575_v57 = vpack.i.bf16 %v721_v53, %v720_v15  ;;  %v1595_v18 = vpack.i.bf16 %v712_v19, %v711_v35  ;;  %v1600_v61 = vpack.i.bf16 %v715_v60, %v714_v36  ;;  %v775_v53 = vld [vmem:[%s2085_s3 + $0x8] sm:$0xff] }
 0x3cb   : > { %1463 = vmatpush1.bf16.msra.mxu1 %v1462_v51 }
 0x3cd   : > { %1561 = vrot.lane.b32.xlu0 %v1560_v52, %s1728_s25 }
 0x3ce   : > { %1571 = vrot.lane.b32.xlu1 %v1570_v54, %s1730_s27 }
 0x3d1   : > { %1576 = vrot.lane.b32.xlu0 %v1575_v57, %s1730_s27 }
 0x3d2   : > { %1581 = vrot.lane.b32.xlu1 %v1580_v58, %s1730_s27  ;;  %s1392_s27 = sshll.u32 %s1776_s19, 1 }
 0x3d3   : > { %p222_p4 = scmp.lt.s32.totalorder %s1392_s27, 3 }
 0x3d5   : > { %1586 = vrot.lane.b32.xlu0 %v1585_v59, %s1729_s26  ;;  %s2095_s27 = smov (!%p222_p4, %s1392_s27), 3 }
 0x3d6   : > { %1591 = vrot.lane.b32.xlu1 %v1585_v59, %s1733_s30  ;;  %s1431_s7 = sshll.u32 %s2095_s27, 4 }
 0x3d7   : > { %s226_s19 = scalar_lea.vmem %s2087_s5, %s1431_s7 }
 0x3d9   : > { %1596 = vrot.lane.b32.xlu0 %v1595_v18, %s1729_s26 }
 0x3da   : > { %1601 = vrot.lane.b32.xlu1 %v1600_v61, %s1729_s26 }
 0x3dd   : > { %1606 = vrot.lane.b32.xlu0 %v1595_v18, %s1733_s30 }
 0x3de   : > { %1611 = vrot.lane.b32.xlu1 %v1600_v61, %s1733_s30 }
 0x43b   : > { %v1557_v27 = vpop.permute.xlu0 %1556 }
 0x43c   : > { %v1567_v63 = vpop.permute.xlu1 %1566  ;;  %v1559_v37 = vunpack.i.h.bf16 %v1557_v27  ;;  %v1558_v4 = vunpack.i.l.bf16 %v1557_v27 }
 0x43d   : > { %v1569_v2 = vunpack.i.h.bf16 %v1567_v63  ;;  %v1568_v39 = vunpack.i.l.bf16 %v1567_v63 }
 0x43f   : > { %v1562_v23 = vpop.permute.xlu0 %1561  ;;  %v743_v3 = vsel %vm307_vm6, %v1568_v39, %v1569_v2  ;;  %v742_v7 = vsel %vm307_vm6, %v1559_v37, %v1568_v39 }
 0x440   : > { %v1564_v5 = vunpack.i.h.bf16 %v1562_v23  ;;  %v1563_v45 = vunpack.i.l.bf16 %v1562_v23  ;;  %v1572_v47 = vpop.permute.xlu1 %1571  ;;  %v1620_v6 = vpack.i.bf16 %v1569_v2, %v743_v3 }
 0x441   : > { %v1574_v8 = vunpack.i.h.bf16 %v1572_v47  ;;  %v1573_v9 = vunpack.i.l.bf16 %v1572_v47  ;;  %v1162_v47 = vld [vmem:[%s2086_s4] sm:$0xff] }
 0x442   : > { %1621 = vrot.lane.b32.xlu1 %v1620_v6, %s1729_s26  ;;  %v741_v10 = vsel %vm307_vm6, %v1563_v45, %v1564_v5  ;;  %v740_v11 = vsel %vm307_vm6, %v1558_v4, %v1563_v45  ;;  %vm845_vm6 = vcmask 392192   ;;  %v1163_v45 = vld [vmem:[%s2086_s4 + $0x8] sm:$0xff] }
 0x443   : > { %v1577_v12 = vpop.permute.xlu0 %1576  ;;  %v1615_v13 = vpack.i.bf16 %v1564_v5, %v741_v10  ;;  %v1464_v16 = vpack.c.bf16 %v743_v3, %v741_v10  ;;  %v1466_v17 = vpack.c.bf16 %v742_v7, %v740_v11  ;;  %v767_v28 = vsel %vm321_vm7, %v1573_v9, %v1574_v8 }
 0x444   : > { %v1579_v21 = vunpack.i.h.bf16 %v1577_v12  ;;  %v1578_v22 = vunpack.i.l.bf16 %v1577_v12  ;;  %v1582_v24 = vpop.permute.xlu1 %1581  ;;  %v1640_v36 = vpack.i.bf16 %v742_v7, %v740_v11  ;;  %v1645_v56 = vpack.i.bf16 %v1574_v8, %v767_v28 }
 0x445   : > { %v1584_v25 = vunpack.i.h.bf16 %v1582_v24  ;;  %v1583_v26 = vunpack.i.l.bf16 %v1582_v24  ;;  %1616 = vrot.lane.b32.xlu0 %v1615_v13, %s1729_s26  ;;  %1465 = vmatprep.subr.bf16.mxu1 %v1464_v16 }
 0x446   : > { %1631 = vrot.lane.b32.xlu1 %v1620_v6, %s1733_s30  ;;  %1467 = vmatpush1.bf16.msra.mxu1 %v1466_v17  ;;  %v769_v29 = vsel %vm321_vm7, %v1578_v22, %v1579_v21 }
 0x447   : > { %v1587_v31 = vpop.permute.xlu0 %1586  ;;  %v1468_v32 = vpack.c.bf16 %v769_v29, %v767_v28  ;;  %v766_v33 = vsel %vm321_vm7, %v1583_v26, %v1573_v9  ;;  %v768_v34 = vsel %vm321_vm7, %v1584_v25, %v1578_v22  ;;  %v1650_v48 = vpack.i.bf16 %v1579_v21, %v769_v29 }
 0x448   : > { %v1592_v35 = vpop.permute.xlu1 %1591  ;;  %v1470_v38 = vpack.c.bf16 %v768_v34, %v766_v33  ;;  %v1588_v42 = vunpack.i.l.bf16 %v1587_v31  ;;  %v1589_v49 = vunpack.i.h.bf16 %v1587_v31  ;;  %v1670_v4 = vpack.i.bf16 %v768_v34, %v766_v33 }
 0x449   : > { %1626 = vrot.lane.b32.xlu0 %v1615_v13, %s1733_s30  ;;  %1469 = vmatprep.subr.bf16.mxu1 %v1468_v32  ;;  %v1593_v54 = vunpack.i.l.bf16 %v1592_v35  ;;  %v1594_v61 = vunpack.i.h.bf16 %v1592_v35 }
 0x44a   : > { %1641 = vrot.lane.b32.xlu1 %v1640_v36, %s1733_s30  ;;  %1471 = vmatpush1.bf16.msra.mxu1 %v1470_v38 }
 0x44b   : > { %v1597_v41 = vpop.permute.xlu0 %1596 }
 0x44c   : > { %v1599_v43 = vunpack.i.h.bf16 %v1597_v41  ;;  %v1598_v44 = vunpack.i.l.bf16 %v1597_v41  ;;  %v1602_v46 = vpop.permute.xlu1 %1601 }
 0x44d   : > { %v1604_v50 = vunpack.i.h.bf16 %v1602_v46  ;;  %v1603_v51 = vunpack.i.l.bf16 %v1602_v46  ;;  %1636 = vrot.lane.b32.xlu0 %v1640_v36, %s1729_s26  ;;  %1415 = vmatmul.mubr.msk.f32.vlgmr.msra.gmra.mrb[0].mxu1 %vm845_vm6, %v774_v40 }
 0x44e   : > { %v821_v20 = vsel %vm335_vm8, %v1588_v42, %v1598_v44  ;;  %1651 = vrot.lane.b32.xlu1 %v1650_v48, %s1729_s26  ;;  %v822_v52 = vsel %vm335_vm8, %v1598_v44, %v1599_v43  ;;  %1005 = vmatprep.mubr.f32.mxu1 %v1727_v1 }
 0x44f   : > { %v823_v55 = vsel %vm335_vm8, %v1589_v49, %v1603_v51  ;;  %v1607_v15 = vpop.permute.xlu0 %1606  ;;  %v824_v57 = vsel %vm335_vm8, %v1603_v51, %v1604_v50 }
 0x450   : > { %v1450_v58 = vpack.c.bf16 %v823_v55, %v821_v20  ;;  %v1609_v59 = vunpack.i.h.bf16 %v1607_v15  ;;  %v1608_v19 = vunpack.i.l.bf16 %v1607_v15  ;;  %v1612_v60 = vpop.permute.xlu1 %1611  ;;  %v1448_v18 = vpack.c.bf16 %v824_v57, %v822_v52 }
 0x451   : > { %v1614_v27 = vunpack.i.h.bf16 %v1612_v60  ;;  %v1613_v63 = vunpack.i.l.bf16 %v1612_v60  ;;  %1646 = vrot.lane.b32.xlu0 %v1645_v56, %s1729_s26  ;;  %1416 = vmatmul.mubr.msk.f32.gmra.mrb[2].mxu1 %vm845_vm6, %v775_v53 }
 0x452   : > { %v1051_v37 = vsel %vm368_vm11, %v1593_v54, %v1608_v19  ;;  %1661 = vrot.lane.b32.xlu1 %v1650_v48, %s1733_s30  ;;  %1449 = vmatprep.subr.bf16.mxu0 %v1448_v18  ;;  %v1052_v2 = vsel %vm368_vm11, %v1608_v19, %v1609_v59 }
 0x453   : > { %v1053_v39 = vsel %vm368_vm11, %v1594_v61, %v1613_v63  ;;  %1451 = vmatpush1.bf16.msra.mxu0 %v1450_v58  ;;  %v1054_v23 = vsel %vm368_vm11, %v1613_v63, %v1614_v27  ;;  %1145 = vmatprep.mubr.f32.mxu1 %v1727_v1 }
 0x454   : > { %v1474_v3 = vpack.c.bf16 %v1053_v39, %v1051_v37  ;;  %v1472_v5 = vpack.c.bf16 %v1054_v23, %v1052_v2 }
 0x455   : > { %1656 = vrot.lane.b32.xlu0 %v1645_v56, %s1733_s30 }
 0x456   : > { %1671 = vrot.lane.b32.xlu1 %v1670_v4, %s1733_s30  ;;  %1473 = vmatprep.subr.bf16.mxu1 %v1472_v5 }
 0x457   : > { %1475 = vmatpush1.bf16.msra.mxu1 %v1474_v3 }
 0x459   : > { %1666 = vrot.lane.b32.xlu0 %v1670_v4, %s1729_s26 }
 0x45a   : > { %1171 = vperm.xlu1 %1554, %v1163_v45  }
 0x45d   : > { %1166 = vperm.xlu0 %1552, %v1162_v47  }
 0x461   : > { %1675 = vset.pattern.permute.xlu0 %v1737_v14 }
 0x4b4   : > { %v1622_v6 = vpop.permute.xlu1 %1621 }
 0x4b5   : > { %v1624_v7 = vunpack.i.h.bf16 %v1622_v6  ;;  %v1623_v8 = vunpack.i.l.bf16 %v1622_v6  ;;  %v1417_v6 = vld [vmem:[%s2085_s3 + $0x20] sm:$0xff] }
 0x4b7   : > { %v1617_v9 = vpop.permute.xlu0 %1616  ;;  %v828_v21 = vsel %vm335_vm8, %v1623_v8, %v1624_v7 }
 0x4b8   : > { %v1619_v10 = vunpack.i.h.bf16 %v1617_v9  ;;  %v1618_v11 = vunpack.i.l.bf16 %v1617_v9  ;;  %v1632_v12 = vpop.permute.xlu1 %1631  ;;  %v1418_v9 = vld [vmem:[%s2085_s3 + $0x28] sm:$0xff] }
 0x4b9   : > { %v1634_v13 = vunpack.i.h.bf16 %v1632_v12  ;;  %v1633_v16 = vunpack.i.l.bf16 %v1632_v12 }
 0x4ba   : > { %v826_v17 = vsel %vm335_vm8, %v1618_v11, %v1619_v10  ;;  %v1412_v10 = vld [vmem:[%s2085_s3 + $0x18] sm:$0xff] }
 0x4bb   : > { %v1627_v22 = vpop.permute.xlu0 %1626  ;;  %v1452_v24 = vpack.c.bf16 %v828_v21, %v826_v17  ;;  %v1058_v33 = vsel %vm368_vm11, %v1633_v16, %v1634_v13 }
 0x4bc   : > { %v1629_v25 = vunpack.i.h.bf16 %v1627_v22  ;;  %v1628_v26 = vunpack.i.l.bf16 %v1627_v22  ;;  %v1642_v28 = vpop.permute.xlu1 %1641 }
 0x4bd   : > { %v1644_v29 = vunpack.i.h.bf16 %v1642_v28  ;;  %v1643_v31 = vunpack.i.l.bf16 %v1642_v28  ;;  %1453 = vmatprep.subr.bf16.mxu0 %v1452_v24 }
 0x4be   : > { %v1056_v32 = vsel %vm368_vm11, %v1628_v26, %v1629_v25 }
 0x4bf   : > { %v1055_v34 = vsel %vm368_vm11, %v1643_v31, %v1628_v26  ;;  %v1057_v35 = vsel %vm368_vm11, %v1644_v29, %v1633_v16  ;;  %v1637_v36 = vpop.permute.xlu0 %1636  ;;  %v1476_v38 = vpack.c.bf16 %v1058_v33, %v1056_v32 }
 0x4c0   : > { %v1478_v40 = vpack.c.bf16 %v1057_v35, %v1055_v34  ;;  %v1639_v41 = vunpack.i.h.bf16 %v1637_v36  ;;  %v1638_v42 = vunpack.i.l.bf16 %v1637_v36  ;;  %v1652_v43 = vpop.permute.xlu1 %1651 }
 0x4c1   : > { %1477 = vmatprep.subr.bf16.mxu1 %v1476_v38  ;;  %v1654_v48 = vunpack.i.h.bf16 %v1652_v43  ;;  %v1653_v49 = vunpack.i.l.bf16 %v1652_v43 }
 0x4c2   : > { %v825_v44 = vsel %vm335_vm8, %v1638_v42, %v1618_v11  ;;  %v827_v46 = vsel %vm335_vm8, %v1639_v41, %v1623_v8  ;;  %1479 = vmatpush1.bf16.msra.mxu1 %v1478_v40  ;;  %v1411_v8 = vld [vmem:[%s2085_s3 + $0x10] sm:$0xff] }
 0x4c3   : > { %v1454_v50 = vpack.c.bf16 %v827_v46, %v825_v44  ;;  %v1647_v51 = vpop.permute.xlu0 %1646  ;;  %v832_v56 = vsel %vm335_vm8, %v1653_v49, %v1654_v48 }
 0x4c4   : > { %v1649_v20 = vunpack.i.h.bf16 %v1647_v51  ;;  %v1648_v52 = vunpack.i.l.bf16 %v1647_v51  ;;  %v1662_v53 = vpop.permute.xlu1 %1661 }
 0x4c5   : > { %1455 = vmatpush1.bf16.msra.mxu0 %v1454_v50  ;;  %v1664_v54 = vunpack.i.h.bf16 %v1662_v53  ;;  %v1663_v55 = vunpack.i.l.bf16 %v1662_v53 }
 0x4c6   : > { %v830_v15 = vsel %vm335_vm8, %v1648_v52, %v1649_v20 }
 0x4c7   : > { %v1657_v57 = vpop.permute.xlu0 %1656  ;;  %v1456_v58 = vpack.c.bf16 %v832_v56, %v830_v15  ;;  %v1062_v63 = vsel %vm368_vm11, %v1663_v55, %v1664_v54 }
 0x4c8   : > { %v1659_v59 = vunpack.i.h.bf16 %v1657_v57  ;;  %v1658_v19 = vunpack.i.l.bf16 %v1657_v57  ;;  %v1672_v60 = vpop.permute.xlu1 %1671 }
 0x4c9   : > { %v1674_v18 = vunpack.i.h.bf16 %v1672_v60  ;;  %v1673_v61 = vunpack.i.l.bf16 %v1672_v60  ;;  %1457 = vmatprep.subr.bf16.mxu0 %v1456_v58 }
 0x4ca   : > { %v1060_v27 = vsel %vm368_vm11, %v1658_v19, %v1659_v59 }
 0x4cb   : > { %v1059_v37 = vsel %vm368_vm11, %v1673_v61, %v1658_v19  ;;  %v1061_v2 = vsel %vm368_vm11, %v1674_v18, %v1663_v55  ;;  %v1667_v39 = vpop.permute.xlu0 %1666  ;;  %v1480_v23 = vpack.c.bf16 %v1062_v63, %v1060_v27 }
 0x4cc   : > { %v1482_v3 = vpack.c.bf16 %v1061_v2, %v1059_v37  ;;  %v1669_v4 = vunpack.i.h.bf16 %v1667_v39  ;;  %v1668_v5 = vunpack.i.l.bf16 %v1667_v39 }
 0x4cd   : > { %1481 = vmatprep.subr.bf16.mxu1 %v1480_v23 }
 0x4ce   : > { %v829_v45 = vsel %vm335_vm8, %v1668_v5, %v1648_v52  ;;  %v831_v47 = vsel %vm335_vm8, %v1669_v4, %v1653_v49  ;;  %1483 = vmatpush1.bf16.msra.mxu1 %v1482_v3 }
 0x4cf   : > { %v1458_v7 = vpack.c.bf16 %v831_v47, %v829_v45 }
 0x4d1   : > { %1459 = vmatpush1.bf16.msra.mxu0 %v1458_v7  ;;  %1419 = vmatmul.mubr.msk.f32.vlgmr.msra.gmra.mrb[0].mxu1 %vm845_vm6, %v1417_v6  ;;  %v1422_v7 = vld [vmem:[%s2086_s4 + $0x18] sm:$0xff] }
 0x4d2   : > { %1151 = vmatprep.mubr.f32.mxu1 %v1727_v1 }
 0x4d4   : > { %1413 = vmatmul.mubr.msk.f32.vlgmr.msra.gmra.mrb[4].mxu0 %vm845_vm6, %v1411_v8 }
 0x4d5   : > { %1420 = vmatmul.mubr.msk.f32.gmra.mrb[2].mxu1 %vm845_vm6, %v1418_v9  ;;  %922 = vmatprep.mubr.f32.mxu0 %v1727_v1 }
 0x4d8   : > { %1414 = vmatmul.mubr.msk.f32.gmra.mrb[6].mxu0 %vm845_vm6, %v1412_v10 }
 0x4d9   : > { %v1172_v32 = vpop.permute.xlu1 %1171 }
 0x4dc   : > { %v1167_v22 = vpop.permute.xlu0 %1166 }
 0x5a4   : > { %v1147_v11 = vpop.f32.mrb[0].mxu1 }
 0x5a5   : > { %v1149_v12 = vpop.f32.mrb[1].mxu1 }
 0x5a7   : > { %v918_v13 = vpop.f32.mrb[4].mxu0 }
 0x5a8   : > { %v1484_v16 = vadd.f32 %v1147_v11, %v918_v13  ;;  %v920_v17 = vpop.f32.mrb[5].mxu0  ;;  %v1153_v21 = vpop.f32.mrb[2].mxu1 }
 0x5a9   : > { %v1485_v24 = vadd.f32 %v1149_v12, %v920_v17  ;;  %v1155_v25 = vpop.f32.mrb[3].mxu1 }
 0x5aa   : > { %v2024_v26 = vadd.f32 %v1484_v16, %v1167_v22 }
 0x5ab   : > { %v2026_v28 = vadd.f32 %v1485_v24, %v1167_v22  ;;  %v924_v1 = vpop.f32.mrb[6].mxu0 }
 0x5ac   : > { %v1486_v29 = vadd.f32 %v1153_v21, %v924_v1  ;;  %v926_v31 = vpop.f32.mrb[7].mxu0  ;;  %v1184_v35 = vmul.f32 %v2024_v26, %v2024_v26 }
 0x5ad   : > { %v1487_v33 = vadd.f32 %v1155_v25, %v926_v31  ;;  %v1178_v34 = vadd.f32 %v2026_v28, %v2024_v26  ;;  %v1185_v36 = vmul.f32 %v2026_v28, %v2026_v28 }
 0x5ae   : > { %v2034_v38 = vadd.f32 %v1486_v29, %v1172_v32 }
 0x5af   : > { %v2036_v40 = vadd.f32 %v1487_v33, %v1172_v32  ;;  %1179 = vadd.xlane.f32.xlu0 %v1178_v34  ;;  %v1188_v41 = vadd.f32 %v1185_v36, %v1184_v35 }
 0x5b0   : > { %v1186_v43 = vmul.f32 %v2034_v38, %v2034_v38 }
 0x5b1   : > { %v1181_v42 = vadd.f32 %v2036_v40, %v2034_v38  ;;  %v1187_v44 = vmul.f32 %v2036_v40, %v2036_v40 }
 0x5b3   : > { %1189 = vadd.xlane.f32.xlu0 %v1188_v41  ;;  %1182 = vadd.xlane.f32.xlu1 %v1181_v42  ;;  %v1191_v46 = vadd.f32 %v1187_v44, %v1186_v43 }
 0x5b7   : > { %1192 = vadd.xlane.f32.xlu0 %v1191_v46 }
 0x63c   : > { %v1180_v48 = vpop.xlane.xlu0 %1179 }
 0x640   : > { %v1190_v49 = vpop.xlane.xlu0 %1189  ;;  %v1183_v51 = vpop.xlane.xlu1 %1182 }
 0x641   : > { %v1194_v50 = vsel %vm509_vm15, %v1180_v48, %v1190_v49 }
 0x642   : > { %v1200_v53 = vrot.slane %v1194_v50, 7  ;;  %v1205_v54 = vrot.slane %v1194_v50, 1 }
 0x644   : > { %v1193_v20 = vpop.xlane.xlu0 %1192 }
 0x645   : > { %v1195_v52 = vsel %vm509_vm15, %v1183_v51, %v1193_v20 }
 0x646   : > { %v1197_v55 = vrot.slane %v1195_v52, 7  ;;  %v1206_v15 = vrot.slane %v1195_v52, 1 }
 0x648   : > { %v1201_v56 = vsel %vm543_vm0, %v1200_v53, %v1197_v55  ;;  %v1204_v57 = vsel %vm543_vm0, %v1197_v55, %v1200_v53  ;;  %v1207_v58 = vsel %vm549_vm1, %v1205_v54, %v1206_v15  ;;  %v1211_v59 = vsel %vm549_vm1, %v1206_v15, %v1205_v54 }
 0x649   : > { %v1213_v19 = vsel %vm1872_vm2, %v1201_v56, %v1211_v59  ;;  %v1212_v60 = vsel %vm1877_vm3, %v1204_v57, %v1207_v58 }
 0x64a   : > { %v1215_v18 = vadd.f32 %v1213_v19, %v1195_v52  ;;  %v1214_v61 = vadd.f32 %v1212_v60, %v1194_v50 }
 0x64c   : > { %v1217_v27 = vmul.f32 0.001953125, %v1215_v18  ;;  %v1216_v63 = vmul.f32 0.001953125, %v1214_v61 }
 0x64e   : > { %v1218_v37 = vmul.f32 %v1216_v63, %v1216_v63  ;;  %v1219_v2 = vmul.f32 %v1217_v27, %v1217_v27 }
 0x650   : > { %1222 = vrot.lane.b32.xlu1 %v1218_v37, %s1738_s16  ;;  %1224 = vrot.lane.b32.xlu0 %v1219_v2, %s1738_s16 }
 0x654   : > { %1232 = vperm.xlu1 %1554, %v1216_v63  }
 0x658   : > { %1237 = vperm.xlu1 %1554, %v1217_v27  }
 0x65c   : > { %1267 = vperm.xlu1 %1554, %v1421_v62  }
 0x660   : > { %1284 = vperm.xlu1 %1554, %v1423_v0  }
 0x664   : > { %1677 = vset.pattern.permute.xlu1 %v1737_v14  ;;  %v1424_v14 = vld [vmem:[%s2086_s4 + $0x28] sm:$0xff] }
 0x6c2   : > { %v1223_v39 = vpop.permute.xlu1 %1222  ;;  %v1225_v23 = vpop.permute.xlu0 %1224 }
 0x6c3   : > { %v1228_v3 = vsub.f32 %v1216_v63, %v1223_v39  ;;  %v1229_v4 = vsub.f32 %v1217_v27, %v1225_v23 }
 0x6c5   : > { %v1244_v5 = vadd.f32 1e-05, %v1228_v3  ;;  %v1245_v45 = vadd.f32 1e-05, %v1229_v4 }
 0x6c7   : > { %1699 = vrsqrt.f32 %v1244_v5 }
 0x6c8   : > { %1701 = vrsqrt.f32 %v1245_v45 }
 0x6d1   : > { %v1700_v47 = vpop.eup %1699 }
 0x6d2   : > { %v1702_v6 = vpop.eup %1701  ;;  %1250 = vperm.xlu0 %1675, %v1700_v47  }
 0x6d3   : > { %1255 = vperm.xlu1 %1677, %v1702_v6   ;;  %v1233_v8 = vpop.permute.xlu1 %1232 }
 0x6d4   : > { %v1240_v12 = vsub.f32 %v2024_v26, %v1233_v8  ;;  %v1241_v13 = vsub.f32 %v2026_v28, %v1233_v8 }
 0x6d6   : > { %1676 = vset.pattern.permute.xlu0 %v1735_v30 }
 0x6d7   : > { %1272 = vperm.xlu0 %1676, %v1422_v7   ;;  %1678 = vset.pattern.permute.xlu1 %v1735_v30  ;;  %v1238_v9 = vpop.permute.xlu1 %1237 }
 0x6d8   : > { %1289 = vperm.xlu1 %1678, %v1424_v14   ;;  %v1242_v24 = vsub.f32 %v2034_v38, %v1238_v9  ;;  %v1243_v25 = vsub.f32 %v2036_v40, %v1238_v9 }
 0x6db   : > { %v1268_v10 = vpop.permute.xlu1 %1267 }
 0x6df   : > { %v1285_v11 = vpop.permute.xlu1 %1284 }
 0x751   : > { %v1251_v16 = vpop.permute.xlu0 %1250 }
 0x752   : > { %v1256_v17 = vpop.permute.xlu1 %1255  ;;  %v1258_v21 = vmul.f32 %v1251_v16, %v1240_v12  ;;  %v1259_v22 = vmul.f32 %v1251_v16, %v1241_v13 }
 0x753   : > { %v1260_v30 = vmul.f32 %v1256_v17, %v1242_v24  ;;  %v1261_v31 = vmul.f32 %v1256_v17, %v1243_v25 }
 0x754   : > { %v1275_v1 = vmul.f32 %v1268_v10, %v1258_v21  ;;  %v1276_v29 = vmul.f32 %v1268_v10, %v1259_v22 }
 0x756   : > { %v1292_v32 = vadd.f32 %v1285_v11, %v1275_v1  ;;  %v1293_v33 = vadd.f32 %v1285_v11, %v1276_v29  ;;  %v1273_v34 = vpop.permute.xlu0 %1272 }
 0x757   : > { %v1277_v35 = vmul.f32 %v1273_v34, %v1260_v30  ;;  %v1278_v26 = vmul.f32 %v1273_v34, %v1261_v31  ;;  %v1290_v36 = vpop.permute.xlu1 %1289 }
 0x758   : > { %v1425_v28 = vmul.f32 -1.442695, %v1292_v32  ;;  %v1426_v41 = vmul.f32 -1.442695, %v1293_v33 }
 0x759   : > { %v1294_v42 = vadd.f32 %v1290_v36, %v1277_v35  ;;  %v1295_v43 = vadd.f32 %v1290_v36, %v1278_v26 }
 0x75a   : > { %1703 = vpow2.f32 %v1425_v28 }
 0x75b   : > { %1705 = vpow2.f32 %v1426_v41  ;;  %v1427_v38 = vmul.f32 -1.442695, %v1294_v42  ;;  %v1428_v44 = vmul.f32 -1.442695, %v1295_v43 }
 0x75d   : > { %1707 = vpow2.f32 %v1427_v38 }
 0x75e   : > { %1709 = vpow2.f32 %v1428_v44 }
 0x764   : > { %v1704_v40 = vpop.eup %1703 }
 0x765   : > { %v1706_v46 = vpop.eup %1705  ;;  %v1308_v48 = vadd.f32 1.0, %v1704_v40 }
 0x766   : > { %v1309_v49 = vadd.f32 1.0, %v1706_v46 }
 0x767   : > { %v1708_v50 = vpop.eup %1707  ;;  %1711 = vrcp.f32 %v1308_v48 }
 0x768   : > { %v1710_v51 = vpop.eup %1709  ;;  %1713 = vrcp.f32 %v1309_v49  ;;  %v1310_v20 = vadd.f32 1.0, %v1708_v50 }
 0x769   : > { %v1311_v52 = vadd.f32 1.0, %v1710_v51 }
 0x76a   : > { %1715 = vrcp.f32 %v1310_v20 }
 0x76b   : > { %1717 = vrcp.f32 %v1311_v52 }
 0x771   : > { %v1712_v53 = vpop.eup %1711 }
 0x772   : > { %v1714_v54 = vpop.eup %1713  ;;  %v1320_v55 = vmul.f32 %v1712_v53, %v1292_v32 }
 0x773   : > { %v1321_v15 = vmul.f32 %v1714_v54, %v1293_v33 }
 0x774   : > { %v1716_v56 = vpop.eup %1715  ;;  %1324 = vst [vmem:[%s226_s19] sm:$0xff] %v1320_v55 }
 0x775   : > { %v1718_v57 = vpop.eup %1717  ;;  %v1322_v58 = vmul.f32 %v1716_v56, %v1294_v42  ;;  %1325 = vst [vmem:[%s226_s19 + $0x8] sm:$0xff] %v1321_v15 }
 0x776   : > { %v1323_v59 = vmul.f32 %v1718_v57, %v1295_v43 }
 0x777   : > { %1326 = vst [vmem:[%s226_s19 + $0x10] sm:$0xff] %v1322_v58 }
 0x778   : > { %1327 = vst [vmem:[%s226_s19 + $0x18] sm:$0xff] %v1323_v59 }
 0x779 PF: > { %s15_s18 = sadd.s32 1, %s1725_s18  }
 0x77a   : > { %p12_p5 = scmp.ge.s32.totalorder %s15_s18, 4  }
 0x77c   :  { %14 = sbr.rel (!%p12_p5) target bundleno = 1 (0x1), region = 76 }

</bundles_post_ra>
